<compile_context>
chip_gen: v7x
topology: tpu7x:2x2x1
jax: 0.10.0
libtpu: 0.0.40
codegen_flags: <defaults>
</compile_context>

<pallas_src>
import functools

import jax
import jax.numpy as jnp
from jax.experimental import pallas as pl
from jax.experimental.pallas import tpu as pltpu


def emha_kernel(x_ref, wqkv_ref, bqkv_ref, wexp_ref, bexp_ref, o_ref, *, heads, nc):
    """One grid step: `tb` tokens of one batch element (whole attention chunks)
    through fused(reduction∘QKV) -> blockwise MHA -> expansion.

    x_ref    : (1, tb, C)          token-major input block (bf16)
    wqkv_ref : (C, 3*c_half)       fused reduce+QKV weight, pre-transposed,
                                   Q columns pre-scaled (bf16)
    bqkv_ref : (1, 3*c_half)       fused bias = Wqkv_scaled @ bred (f32)
    wexp_ref : (C, c_half)         expansion conv weight (bf16)
    bexp_ref : (C, 1)              expansion bias (f32)
    o_ref    : (1, C, tb)          channel-major, lane-dense output block (f32)
    """
    tb = x_ref.shape[1]
    c3 = wqkv_ref.shape[1]
    c_half = c3 // 3
    d = c_half // heads
    cpb = tb // nc                       # attention chunks handled by this step

    x = x_ref[0]                                                     # (tb, C)

    # Fused reduction conv + QKV projection (no nonlinearity between them):
    # one GEMM, one bias add, one wide bf16 cast.
    qkv = jnp.dot(x, wqkv_ref[...],
                  preferred_element_type=jnp.float32) + bqkv_ref[...]
    qkv = qkv.astype(jnp.bfloat16)                                   # (tb, 3*c_half)

    # Column layout of qkv is [q | k | v], each (heads, d) within c_half cols.
    q = qkv[:, :c_half].reshape(cpb, nc, c_half)
    k = qkv[:, c_half:2 * c_half].reshape(cpb, nc, c_half)
    v = qkv[:, 2 * c_half:].reshape(cpb, nc, c_half)

    # Block-diagonal multi-head attention: each chunk of `nc` tokens attends
    # only within itself.  Chunk-batched 3-D einsums (leading batch dim only);
    # heads is a short static loop, outputs assembled with a single concat
    # (no VMEM scratch, no masked narrow stores).
    outs = []
    for h in range(heads):
        sl = slice(h * d, (h + 1) * d)
        s = jnp.einsum('cqd,ckd->cqk', q[..., sl], k[..., sl],
                       preferred_element_type=jnp.float32)           # (cpb, nc, nc)
        s = s - jnp.max(s, axis=-1, keepdims=True)
        p = jnp.exp(s)
        p = p * pl.reciprocal(jnp.sum(p, axis=-1, keepdims=True), approx=True)
        outs.append(jnp.einsum('cqk,ckd->cqd', p.astype(jnp.bfloat16), v[..., sl],
                               preferred_element_type=jnp.float32))   # (cpb, nc, d)

    attn = jnp.concatenate(outs, axis=-1)                             # (cpb, nc, c_half)
    attn = attn.reshape(tb, c_half).astype(jnp.bfloat16)

    # 1x1 expansion conv as A·Bᵀ: both contractions on the minor dim, so the
    # MXU consumes this layout natively — no XLU transpose, and the result is
    # already channel-major (C, tb) == lane-dense output block.
    out = jax.lax.dot_general(
        wexp_ref[...], attn,
        dimension_numbers=(((1,), (1,)), ((), ())),
        preferred_element_type=jnp.float32)                           # (C, tb)
    o_ref[0] = out + bexp_ref[...]


def _pick_block_tokens(N, nc, target=1024):
    """Pick a per-batch token block: a multiple of the chunk size `nc` that
    divides N and is a multiple of 128 (lane-dense output stores); fall back
    to the full sequence if no aligned divisor exists.  The batch axis is a
    separate grid dimension, so with B >= 2 the grid always has >= 2 steps
    (keeps both v7x TensorCores busy even when this falls back to tb == N)."""
    best, best_gap = N, abs(N - target)
    t = nc
    while t < N:
        if N % t == 0 and t % 128 == 0:
            gap = abs(t - target)
            if gap < best_gap:
                best, best_gap = t, gap
        t += nc
    return best


def emha_forward(x, params, *, heads, splitfactors, block_tokens=None):
    B, C, N = x.shape
    assert C % 2 == 0, "inChannels must be even"
    c_half = C // 2
    assert c_half % heads == 0, "inChannels // 2 must be divisible by heads"
    assert N % splitfactors == 0, "sequence length must be divisible by splitfactors"
    d = c_half // heads
    nc = N // splitfactors
    scale = float(d) ** (-0.5)

    wred, bred, wqkv, wexp, bexp = params

    # ---- Host-side weight prep (done once, in f32, then cast to bf16) ----
    # Fold the softmax scale into the Q rows of the QKV weight, then fuse the
    # reduction conv into the QKV projection (no nonlinearity between them):
    #   qkv = Wqkv_s @ (Wred @ x + bred) = (Wqkv_s @ Wred) @ x + Wqkv_s @ bred
    row_scale = jnp.concatenate(
        [jnp.full((c_half, 1), scale, jnp.float32),
         jnp.ones((2 * c_half, 1), jnp.float32)], axis=0)
    wqkv_s = wqkv.astype(jnp.float32) * row_scale                    # (3c_half, c_half)
    w_fused = wqkv_s @ wred.astype(jnp.float32)                      # (3c_half, C)
    b_fused = wqkv_s @ bred.astype(jnp.float32).reshape(c_half, 1)   # (3c_half, 1)

    wqkv_t = w_fused.T.astype(jnp.bfloat16)                          # (C, 3c_half)
    bqkv_r = b_fused.reshape(1, 3 * c_half).astype(jnp.float32)      # (1, 3c_half)
    wexp_b = wexp.astype(jnp.bfloat16)                               # (C, c_half)
    bexp_c = bexp.reshape(C, 1).astype(jnp.float32)                  # (C, 1)

    # Token-major bf16 input (the only host-side activation relayout; the
    # output is written in its final (B, C, N) layout directly by the kernel).
    x_t = x.transpose(0, 2, 1).astype(jnp.bfloat16)                  # (B, N, C)

    tb = block_tokens if block_tokens is not None else _pick_block_tokens(N, nc)
    assert N % tb == 0 and tb % nc == 0
    grid = (B, N // tb)

    kernel = functools.partial(emha_kernel, heads=heads, nc=nc)

    # Advisory cost hint for the XLA scheduler.
    flops = 2 * B * N * C * (3 * c_half)                       # fused reduce+QKV GEMM
    flops += 4 * B * splitfactors * heads * nc * nc * d        # QK^T + PV
    flops += 2 * B * N * c_half * C                            # expansion GEMM
    transcendentals = B * splitfactors * heads * nc * nc       # exp
    bytes_accessed = (x_t.size * 2 + B * C * N * 4
                      + (wqkv_t.size + wexp_b.size) * 2
                      + (bqkv_r.size + bexp_c.size) * 4)

    out = pl.pallas_call(
        kernel,
        out_shape=jax.ShapeDtypeStruct((B, C, N), jnp.float32),
        grid_spec=pltpu.PrefetchScalarGridSpec(
            num_scalar_prefetch=0,
            grid=grid,
            in_specs=[
                pl.BlockSpec((1, tb, C), lambda b, j: (b, j, 0)),           # x token-major
                pl.BlockSpec((C, 3 * c_half), lambda b, j: (0, 0)),         # fused W^T
                pl.BlockSpec((1, 3 * c_half), lambda b, j: (0, 0)),         # fused bias
                pl.BlockSpec((C, c_half), lambda b, j: (0, 0)),             # expansion W
                pl.BlockSpec((C, 1), lambda b, j: (0, 0)),                  # expansion bias
            ],
            out_specs=pl.BlockSpec((1, C, tb), lambda b, j: (b, 0, j)),     # (B, C, N) direct
        ),
        compiler_params=pltpu.CompilerParams(
            dimension_semantics=("parallel", "parallel"),
            # <= ~48 MiB so the same tiling also fits v7x's 64 MiB VMEM.
            vmem_limit_bytes=48 * 1024 * 1024,
        ),
        cost_estimate=pl.CostEstimate(
            flops=int(flops),
            transcendentals=int(transcendentals),
            bytes_accessed=int(bytes_accessed),
        ),
    )(x_t, wqkv_t, bqkv_r, wexp_b, bexp_c)

    return out


def emha_ref(x, params, *, heads, splitfactors):
    """Pure-JAX f32 reference mirroring the PyTorch forward."""
    wred, bred, wqkv, wexp, bexp = params
    B, C, N = x.shape
    c_half = C // 2
    d = c_half // heads
    scale = float(d) ** (-0.5)
    red = jnp.einsum('oc,bcn->bon', wred, x) + bred[None]        # (B, C//2, N)
    xt = jnp.swapaxes(red, -1, -2)                               # (B, N, C//2)
    qkv = xt @ wqkv.T                                            # (B, N, 3*C//2)
    q, k, v = jnp.split(qkv, 3, axis=-1)

    def to_heads(t):
        return t.reshape(B, N, heads, d).transpose(0, 2, 1, 3)   # (B, h, N, d)

    q, k, v = to_heads(q), to_heads(k), to_heads(v)
    nc = N // splitfactors
    pool = []
    for i in range(splitfactors):
        qi = q[:, :, i * nc:(i + 1) * nc]
        ki = k[:, :, i * nc:(i + 1) * nc]
        vi = v[:, :, i * nc:(i + 1) * nc]
        s = jnp.einsum('bhqd,bhkd->bhqk', qi, ki) * scale
        p = jax.nn.softmax(s, axis=-1)
        o = jnp.einsum('bhqk,bhkd->bhqd', p, vi)
        pool.append(o.transpose(0, 2, 1, 3).reshape(B, nc, c_half))
    out = jnp.concatenate(pool, axis=1)                          # (B, N, C//2)
    out = jnp.swapaxes(out, -1, -2)                              # (B, C//2, N)
    return jnp.einsum('oc,bcn->bon', wexp, out) + bexp[None]     # (B, C, N)


if __name__ == "__main__":
    B, C, N = 2, 32, 16          # batch, inChannels, sequence length
    heads, splitfactors = 8, 4   # dimHead = C // (2*heads) = 2, chunk len = N//4 = 4
    c_half = C // 2

    key = jax.random.PRNGKey(0)
    k1, k2, k3, k4, k5, k6 = jax.random.split(key, 6)
    x = jax.random.normal(k1, (B, C, N), jnp.float32)
    # Deterministic synthetic parameters (Conv1d 1x1 weights stored as (out, in)).
    wred = jax.random.normal(k2, (c_half, C), jnp.float32) * 0.1
    bred = jax.random.normal(k3, (c_half, 1), jnp.float32) * 0.1
    wqkv = jax.random.normal(k4, (3 * c_half, c_half), jnp.float32) * 0.1
    wexp = jax.random.normal(k5, (C, c_half), jnp.float32) * 0.1
    bexp = jax.random.normal(k6, (C, 1), jnp.float32) * 0.1
    params = (wred, bred, wqkv, wexp, bexp)

    out = emha_forward(x, params, heads=heads, splitfactors=splitfactors)
    out = jax.block_until_ready(out)

    ref = emha_ref(x, params, heads=heads, splitfactors=splitfactors)
    assert out.shape == (B, C, N)
    err = float(jnp.max(jnp.abs(out - ref)))
    # bf16 MXU inputs with f32 accumulation + fused/pre-scaled weights ->
    # slightly looser than pure-f32 tolerance.
    assert jnp.allclose(out, ref, atol=2e-2, rtol=2e-2), err
    print("KERNEL_OK")
</pallas_src>

<mosaic_0001>
module attributes {stable_mosaic.version = 11 : i64} {
  func.func @emha_kernel(%arg0: i32, %arg1: i32, %arg2: memref<1x16x32xbf16, #tpu.memory_space<vmem>>, %arg3: memref<32x48xbf16, #tpu.memory_space<vmem>>, %arg4: memref<1x48xf32, #tpu.memory_space<vmem>>, %arg5: memref<32x16xbf16, #tpu.memory_space<vmem>>, %arg6: memref<32x1xf32, #tpu.memory_space<vmem>>, %arg7: memref<1x32x16xf32, #tpu.memory_space<vmem>>) attributes {dimension_semantics = [#tpu.dimension_semantics<parallel>, #tpu.dimension_semantics<parallel>], iteration_bounds = array<i64: 2, 1>, scalar_prefetch = 0 : i64, scratch_operands = 0 : i64, tpu.core_type = #tpu.core_type<tc>, window_params = [{transform_indices = @transform_0, window_bounds = array<i64: 1, 16, 32>}, {pipeline_mode = #tpu.pipeline_mode<synchronous>, transform_indices = @transform_1, window_bounds = array<i64: 32, 48>}, {pipeline_mode = #tpu.pipeline_mode<synchronous>, transform_indices = @transform_2, window_bounds = array<i64: 1, 48>}, {pipeline_mode = #tpu.pipeline_mode<synchronous>, transform_indices = @transform_3, window_bounds = array<i64: 32, 16>}, {pipeline_mode = #tpu.pipeline_mode<synchronous>, transform_indices = @transform_4, window_bounds = array<i64: 32, 1>}, {transform_indices = @transform_5, window_bounds = array<i64: 1, 32, 16>}]} {
    %c0 = arith.constant 0 : index
    %c0_0 = arith.constant 0 : index
    %c0_1 = arith.constant 0 : index
    %0 = vector.load %arg2[%c0, %c0_0, %c0_1] : memref<1x16x32xbf16, #tpu.memory_space<vmem>>, vector<1x16x32xbf16>
    %1 = vector.shape_cast %0 : vector<1x16x32xbf16> to vector<16x32xbf16>
    %c0_2 = arith.constant 0 : index
    %c0_3 = arith.constant 0 : index
    %2 = vector.load %arg3[%c0_2, %c0_3] : memref<32x48xbf16, #tpu.memory_space<vmem>>, vector<32x48xbf16>
    %cst = arith.constant dense<0.000000e+00> : vector<16x48xf32>
    %3 = tpu.matmul %1, %2, %cst {dimension_numbers = #tpu.dot_dimension_numbers<[1], [0], [0], [1], [0, 0, 1, 1], [], []>} : vector<16x32xbf16>, vector<32x48xbf16>, vector<16x48xf32> -> vector<16x48xf32>
    %c0_4 = arith.constant 0 : index
    %c0_5 = arith.constant 0 : index
    %4 = vector.load %arg4[%c0_4, %c0_5] : memref<1x48xf32, #tpu.memory_space<vmem>>, vector<1x48xf32>
    %5 = vector.broadcast %4 : vector<1x48xf32> to vector<16x48xf32>
    %6 = arith.addf %3, %5 : vector<16x48xf32>
    %7 = arith.truncf %6 : vector<16x48xf32> to vector<16x48xbf16>
    %8 = vector.extract_strided_slice %7 {offsets = [0, 0], sizes = [16, 16], strides = [1, 1]} : vector<16x48xbf16> to vector<16x16xbf16>
    %9 = vector.shape_cast %8 : vector<16x16xbf16> to vector<4x4x16xbf16>
    %10 = vector.extract_strided_slice %7 {offsets = [0, 16], sizes = [16, 16], strides = [1, 1]} : vector<16x48xbf16> to vector<16x16xbf16>
    %11 = vector.shape_cast %10 : vector<16x16xbf16> to vector<4x4x16xbf16>
    %12 = vector.extract_strided_slice %7 {offsets = [0, 32], sizes = [16, 16], strides = [1, 1]} : vector<16x48xbf16> to vector<16x16xbf16>
    %13 = vector.shape_cast %12 : vector<16x16xbf16> to vector<4x4x16xbf16>
    %14 = vector.extract_strided_slice %9 {offsets = [0, 0, 0], sizes = [4, 4, 2], strides = [1, 1, 1]} : vector<4x4x16xbf16> to vector<4x4x2xbf16>
    %15 = vector.extract_strided_slice %11 {offsets = [0, 0, 0], sizes = [4, 4, 2], strides = [1, 1, 1]} : vector<4x4x16xbf16> to vector<4x4x2xbf16>
    "tpu.trace_start"() <{level = 10 : i32, message = "cqd,ckd->cqk"}> : () -> ()
    %cst_6 = arith.constant dense<0.000000e+00> : vector<4x4x4xf32>
    %16 = tpu.matmul %14, %15, %cst_6 {dimension_numbers = #tpu.dot_dimension_numbers<[2], [2], [1], [1], [0, 0, 0, 1, 1, 1], [0], [0]>} : vector<4x4x2xbf16>, vector<4x4x2xbf16>, vector<4x4x4xf32> -> vector<4x4x4xf32>
    "tpu.trace_stop"() : () -> ()
    %cst_7 = arith.constant dense<0xFF800000> : vector<4x4xf32>
    %17 = vector.multi_reduction <maximumf>, %16, %cst_7 [2] : vector<4x4x4xf32> to vector<4x4xf32>
    %18 = vector.shape_cast %17 : vector<4x4xf32> to vector<4x4x1xf32>
    %19 = vector.broadcast %18 : vector<4x4x1xf32> to vector<4x4x4xf32>
    %20 = arith.subf %16, %19 : vector<4x4x4xf32>
    %21 = math.exp %20 : vector<4x4x4xf32>
    %cst_8 = arith.constant dense<0.000000e+00> : vector<4x4xf32>
    %22 = vector.multi_reduction <add>, %21, %cst_8 [2] : vector<4x4x4xf32> to vector<4x4xf32>
    %23 = vector.shape_cast %22 : vector<4x4xf32> to vector<4x4x1xf32>
    %24 = tpu.reciprocal %23 {approx = true} : vector<4x4x1xf32> -> vector<4x4x1xf32>
    %25 = vector.broadcast %24 : vector<4x4x1xf32> to vector<4x4x4xf32>
    %26 = arith.mulf %21, %25 : vector<4x4x4xf32>
    %27 = arith.truncf %26 : vector<4x4x4xf32> to vector<4x4x4xbf16>
    %28 = vector.extract_strided_slice %13 {offsets = [0, 0, 0], sizes = [4, 4, 2], strides = [1, 1, 1]} : vector<4x4x16xbf16> to vector<4x4x2xbf16>
    "tpu.trace_start"() <{level = 10 : i32, message = "cqk,ckd->cqd"}> : () -> ()
    %cst_9 = arith.constant dense<0.000000e+00> : vector<4x4x2xf32>
    %29 = tpu.matmul %27, %28, %cst_9 {dimension_numbers = #tpu.dot_dimension_numbers<[2], [1], [1], [2], [0, 0, 0, 1, 1, 2], [0], [0]>} : vector<4x4x4xbf16>, vector<4x4x2xbf16>, vector<4x4x2xf32> -> vector<4x4x2xf32>
    "tpu.trace_stop"() : () -> ()
    %30 = vector.extract_strided_slice %9 {offsets = [0, 0, 2], sizes = [4, 4, 2], strides = [1, 1, 1]} : vector<4x4x16xbf16> to vector<4x4x2xbf16>
    %31 = vector.extract_strided_slice %11 {offsets = [0, 0, 2], sizes = [4, 4, 2], strides = [1, 1, 1]} : vector<4x4x16xbf16> to vector<4x4x2xbf16>
    "tpu.trace_start"() <{level = 10 : i32, message = "cqd,ckd->cqk"}> : () -> ()
    %cst_10 = arith.constant dense<0.000000e+00> : vector<4x4x4xf32>
    %32 = tpu.matmul %30, %31, %cst_10 {dimension_numbers = #tpu.dot_dimension_numbers<[2], [2], [1], [1], [0, 0, 0, 1, 1, 1], [0], [0]>} : vector<4x4x2xbf16>, vector<4x4x2xbf16>, vector<4x4x4xf32> -> vector<4x4x4xf32>
    "tpu.trace_stop"() : () -> ()
    %cst_11 = arith.constant dense<0xFF800000> : vector<4x4xf32>
    %33 = vector.multi_reduction <maximumf>, %32, %cst_11 [2] : vector<4x4x4xf32> to vector<4x4xf32>
    %34 = vector.shape_cast %33 : vector<4x4xf32> to vector<4x4x1xf32>
    %35 = vector.broadcast %34 : vector<4x4x1xf32> to vector<4x4x4xf32>
    %36 = arith.subf %32, %35 : vector<4x4x4xf32>
    %37 = math.exp %36 : vector<4x4x4xf32>
    %cst_12 = arith.constant dense<0.000000e+00> : vector<4x4xf32>
    %38 = vector.multi_reduction <add>, %37, %cst_12 [2] : vector<4x4x4xf32> to vector<4x4xf32>
    %39 = vector.shape_cast %38 : vector<4x4xf32> to vector<4x4x1xf32>
    %40 = tpu.reciprocal %39 {approx = true} : vector<4x4x1xf32> -> vector<4x4x1xf32>
    %41 = vector.broadcast %40 : vector<4x4x1xf32> to vector<4x4x4xf32>
    %42 = arith.mulf %37, %41 : vector<4x4x4xf32>
    %43 = arith.truncf %42 : vector<4x4x4xf32> to vector<4x4x4xbf16>
    %44 = vector.extract_strided_slice %13 {offsets = [0, 0, 2], sizes = [4, 4, 2], strides = [1, 1, 1]} : vector<4x4x16xbf16> to vector<4x4x2xbf16>
    "tpu.trace_start"() <{level = 10 : i32, message = "cqk,ckd->cqd"}> : () -> ()
    %cst_13 = arith.constant dense<0.000000e+00> : vector<4x4x2xf32>
    %45 = tpu.matmul %43, %44, %cst_13 {dimension_numbers = #tpu.dot_dimension_numbers<[2], [1], [1], [2], [0, 0, 0, 1, 1, 2], [0], [0]>} : vector<4x4x4xbf16>, vector<4x4x2xbf16>, vector<4x4x2xf32> -> vector<4x4x2xf32>
    "tpu.trace_stop"() : () -> ()
    %46 = vector.extract_strided_slice %9 {offsets = [0, 0, 4], sizes = [4, 4, 2], strides = [1, 1, 1]} : vector<4x4x16xbf16> to vector<4x4x2xbf16>
    %47 = vector.extract_strided_slice %11 {offsets = [0, 0, 4], sizes = [4, 4, 2], strides = [1, 1, 1]} : vector<4x4x16xbf16> to vector<4x4x2xbf16>
    "tpu.trace_start"() <{level = 10 : i32, message = "cqd,ckd->cqk"}> : () -> ()
    %cst_14 = arith.constant dense<0.000000e+00> : vector<4x4x4xf32>
    %48 = tpu.matmul %46, %47, %cst_14 {dimension_numbers = #tpu.dot_dimension_numbers<[2], [2], [1], [1], [0, 0, 0, 1, 1, 1], [0], [0]>} : vector<4x4x2xbf16>, vector<4x4x2xbf16>, vector<4x4x4xf32> -> vector<4x4x4xf32>
    "tpu.trace_stop"() : () -> ()
    %cst_15 = arith.constant dense<0xFF800000> : vector<4x4xf32>
    %49 = vector.multi_reduction <maximumf>, %48, %cst_15 [2] : vector<4x4x4xf32> to vector<4x4xf32>
    %50 = vector.shape_cast %49 : vector<4x4xf32> to vector<4x4x1xf32>
    %51 = vector.broadcast %50 : vector<4x4x1xf32> to vector<4x4x4xf32>
    %52 = arith.subf %48, %51 : vector<4x4x4xf32>
    %53 = math.exp %52 : vector<4x4x4xf32>
    %cst_16 = arith.constant dense<0.000000e+00> : vector<4x4xf32>
    %54 = vector.multi_reduction <add>, %53, %cst_16 [2] : vector<4x4x4xf32> to vector<4x4xf32>
    %55 = vector.shape_cast %54 : vector<4x4xf32> to vector<4x4x1xf32>
    %56 = tpu.reciprocal %55 {approx = true} : vector<4x4x1xf32> -> vector<4x4x1xf32>
    %57 = vector.broadcast %56 : vector<4x4x1xf32> to vector<4x4x4xf32>
    %58 = arith.mulf %53, %57 : vector<4x4x4xf32>
    %59 = arith.truncf %58 : vector<4x4x4xf32> to vector<4x4x4xbf16>
    %60 = vector.extract_strided_slice %13 {offsets = [0, 0, 4], sizes = [4, 4, 2], strides = [1, 1, 1]} : vector<4x4x16xbf16> to vector<4x4x2xbf16>
    "tpu.trace_start"() <{level = 10 : i32, message = "cqk,ckd->cqd"}> : () -> ()
    %cst_17 = arith.constant dense<0.000000e+00> : vector<4x4x2xf32>
    %61 = tpu.matmul %59, %60, %cst_17 {dimension_numbers = #tpu.dot_dimension_numbers<[2], [1], [1], [2], [0, 0, 0, 1, 1, 2], [0], [0]>} : vector<4x4x4xbf16>, vector<4x4x2xbf16>, vector<4x4x2xf32> -> vector<4x4x2xf32>
    "tpu.trace_stop"() : () -> ()
    %62 = vector.extract_strided_slice %9 {offsets = [0, 0, 6], sizes = [4, 4, 2], strides = [1, 1, 1]} : vector<4x4x16xbf16> to vector<4x4x2xbf16>
    %63 = vector.extract_strided_slice %11 {offsets = [0, 0, 6], sizes = [4, 4, 2], strides = [1, 1, 1]} : vector<4x4x16xbf16> to vector<4x4x2xbf16>
    "tpu.trace_start"() <{level = 10 : i32, message = "cqd,ckd->cqk"}> : () -> ()
    %cst_18 = arith.constant dense<0.000000e+00> : vector<4x4x4xf32>
    %64 = tpu.matmul %62, %63, %cst_18 {dimension_numbers = #tpu.dot_dimension_numbers<[2], [2], [1], [1], [0, 0, 0, 1, 1, 1], [0], [0]>} : vector<4x4x2xbf16>, vector<4x4x2xbf16>, vector<4x4x4xf32> -> vector<4x4x4xf32>
    "tpu.trace_stop"() : () -> ()
    %cst_19 = arith.constant dense<0xFF800000> : vector<4x4xf32>
    %65 = vector.multi_reduction <maximumf>, %64, %cst_19 [2] : vector<4x4x4xf32> to vector<4x4xf32>
    %66 = vector.shape_cast %65 : vector<4x4xf32> to vector<4x4x1xf32>
    %67 = vector.broadcast %66 : vector<4x4x1xf32> to vector<4x4x4xf32>
    %68 = arith.subf %64, %67 : vector<4x4x4xf32>
    %69 = math.exp %68 : vector<4x4x4xf32>
    %cst_20 = arith.constant dense<0.000000e+00> : vector<4x4xf32>
    %70 = vector.multi_reduction <add>, %69, %cst_20 [2] : vector<4x4x4xf32> to vector<4x4xf32>
    %71 = vector.shape_cast %70 : vector<4x4xf32> to vector<4x4x1xf32>
    %72 = tpu.reciprocal %71 {approx = true} : vector<4x4x1xf32> -> vector<4x4x1xf32>
    %73 = vector.broadcast %72 : vector<4x4x1xf32> to vector<4x4x4xf32>
    %74 = arith.mulf %69, %73 : vector<4x4x4xf32>
    %75 = arith.truncf %74 : vector<4x4x4xf32> to vector<4x4x4xbf16>
    %76 = vector.extract_strided_slice %13 {offsets = [0, 0, 6], sizes = [4, 4, 2], strides = [1, 1, 1]} : vector<4x4x16xbf16> to vector<4x4x2xbf16>
    "tpu.trace_start"() <{level = 10 : i32, message = "cqk,ckd->cqd"}> : () -> ()
    %cst_21 = arith.constant dense<0.000000e+00> : vector<4x4x2xf32>
    %77 = tpu.matmul %75, %76, %cst_21 {dimension_numbers = #tpu.dot_dimension_numbers<[2], [1], [1], [2], [0, 0, 0, 1, 1, 2], [0], [0]>} : vector<4x4x4xbf16>, vector<4x4x2xbf16>, vector<4x4x2xf32> -> vector<4x4x2xf32>
    "tpu.trace_stop"() : () -> ()
    %78 = vector.extract_strided_slice %9 {offsets = [0, 0, 8], sizes = [4, 4, 2], strides = [1, 1, 1]} : vector<4x4x16xbf16> to vector<4x4x2xbf16>
    %79 = vector.extract_strided_slice %11 {offsets = [0, 0, 8], sizes = [4, 4, 2], strides = [1, 1, 1]} : vector<4x4x16xbf16> to vector<4x4x2xbf16>
    "tpu.trace_start"() <{level = 10 : i32, message = "cqd,ckd->cqk"}> : () -> ()
    %cst_22 = arith.constant dense<0.000000e+00> : vector<4x4x4xf32>
    %80 = tpu.matmul %78, %79, %cst_22 {dimension_numbers = #tpu.dot_dimension_numbers<[2], [2], [1], [1], [0, 0, 0, 1, 1, 1], [0], [0]>} : vector<4x4x2xbf16>, vector<4x4x2xbf16>, vector<4x4x4xf32> -> vector<4x4x4xf32>
    "tpu.trace_stop"() : () -> ()
    %cst_23 = arith.constant dense<0xFF800000> : vector<4x4xf32>
    %81 = vector.multi_reduction <maximumf>, %80, %cst_23 [2] : vector<4x4x4xf32> to vector<4x4xf32>
    %82 = vector.shape_cast %81 : vector<4x4xf32> to vector<4x4x1xf32>
    %83 = vector.broadcast %82 : vector<4x4x1xf32> to vector<4x4x4xf32>
    %84 = arith.subf %80, %83 : vector<4x4x4xf32>
    %85 = math.exp %84 : vector<4x4x4xf32>
    %cst_24 = arith.constant dense<0.000000e+00> : vector<4x4xf32>
    %86 = vector.multi_reduction <add>, %85, %cst_24 [2] : vector<4x4x4xf32> to vector<4x4xf32>
    %87 = vector.shape_cast %86 : vector<4x4xf32> to vector<4x4x1xf32>
    %88 = tpu.reciprocal %87 {approx = true} : vector<4x4x1xf32> -> vector<4x4x1xf32>
    %89 = vector.broadcast %88 : vector<4x4x1xf32> to vector<4x4x4xf32>
    %90 = arith.mulf %85, %89 : vector<4x4x4xf32>
    %91 = arith.truncf %90 : vector<4x4x4xf32> to vector<4x4x4xbf16>
    %92 = vector.extract_strided_slice %13 {offsets = [0, 0, 8], sizes = [4, 4, 2], strides = [1, 1, 1]} : vector<4x4x16xbf16> to vector<4x4x2xbf16>
    "tpu.trace_start"() <{level = 10 : i32, message = "cqk,ckd->cqd"}> : () -> ()
    %cst_25 = arith.constant dense<0.000000e+00> : vector<4x4x2xf32>
    %93 = tpu.matmul %91, %92, %cst_25 {dimension_numbers = #tpu.dot_dimension_numbers<[2], [1], [1], [2], [0, 0, 0, 1, 1, 2], [0], [0]>} : vector<4x4x4xbf16>, vector<4x4x2xbf16>, vector<4x4x2xf32> -> vector<4x4x2xf32>
    "tpu.trace_stop"() : () -> ()
    %94 = vector.extract_strided_slice %9 {offsets = [0, 0, 10], sizes = [4, 4, 2], strides = [1, 1, 1]} : vector<4x4x16xbf16> to vector<4x4x2xbf16>
    %95 = vector.extract_strided_slice %11 {offsets = [0, 0, 10], sizes = [4, 4, 2], strides = [1, 1, 1]} : vector<4x4x16xbf16> to vector<4x4x2xbf16>
    "tpu.trace_start"() <{level = 10 : i32, message = "cqd,ckd->cqk"}> : () -> ()
    %cst_26 = arith.constant dense<0.000000e+00> : vector<4x4x4xf32>
    %96 = tpu.matmul %94, %95, %cst_26 {dimension_numbers = #tpu.dot_dimension_numbers<[2], [2], [1], [1], [0, 0, 0, 1, 1, 1], [0], [0]>} : vector<4x4x2xbf16>, vector<4x4x2xbf16>, vector<4x4x4xf32> -> vector<4x4x4xf32>
    "tpu.trace_stop"() : () -> ()
    %cst_27 = arith.constant dense<0xFF800000> : vector<4x4xf32>
    %97 = vector.multi_reduction <maximumf>, %96, %cst_27 [2] : vector<4x4x4xf32> to vector<4x4xf32>
    %98 = vector.shape_cast %97 : vector<4x4xf32> to vector<4x4x1xf32>
    %99 = vector.broadcast %98 : vector<4x4x1xf32> to vector<4x4x4xf32>
    %100 = arith.subf %96, %99 : vector<4x4x4xf32>
    %101 = math.exp %100 : vector<4x4x4xf32>
    %cst_28 = arith.constant dense<0.000000e+00> : vector<4x4xf32>
    %102 = vector.multi_reduction <add>, %101, %cst_28 [2] : vector<4x4x4xf32> to vector<4x4xf32>
    %103 = vector.shape_cast %102 : vector<4x4xf32> to vector<4x4x1xf32>
    %104 = tpu.reciprocal %103 {approx = true} : vector<4x4x1xf32> -> vector<4x4x1xf32>
    %105 = vector.broadcast %104 : vector<4x4x1xf32> to vector<4x4x4xf32>
    %106 = arith.mulf %101, %105 : vector<4x4x4xf32>
    %107 = arith.truncf %106 : vector<4x4x4xf32> to vector<4x4x4xbf16>
    %108 = vector.extract_strided_slice %13 {offsets = [0, 0, 10], sizes = [4, 4, 2], strides = [1, 1, 1]} : vector<4x4x16xbf16> to vector<4x4x2xbf16>
    "tpu.trace_start"() <{level = 10 : i32, message = "cqk,ckd->cqd"}> : () -> ()
    %cst_29 = arith.constant dense<0.000000e+00> : vector<4x4x2xf32>
    %109 = tpu.matmul %107, %108, %cst_29 {dimension_numbers = #tpu.dot_dimension_numbers<[2], [1], [1], [2], [0, 0, 0, 1, 1, 2], [0], [0]>} : vector<4x4x4xbf16>, vector<4x4x2xbf16>, vector<4x4x2xf32> -> vector<4x4x2xf32>
    "tpu.trace_stop"() : () -> ()
    %110 = vector.extract_strided_slice %9 {offsets = [0, 0, 12], sizes = [4, 4, 2], strides = [1, 1, 1]} : vector<4x4x16xbf16> to vector<4x4x2xbf16>
    %111 = vector.extract_strided_slice %11 {offsets = [0, 0, 12], sizes = [4, 4, 2], strides = [1, 1, 1]} : vector<4x4x16xbf16> to vector<4x4x2xbf16>
    "tpu.trace_start"() <{level = 10 : i32, message = "cqd,ckd->cqk"}> : () -> ()
    %cst_30 = arith.constant dense<0.000000e+00> : vector<4x4x4xf32>
    %112 = tpu.matmul %110, %111, %cst_30 {dimension_numbers = #tpu.dot_dimension_numbers<[2], [2], [1], [1], [0, 0, 0, 1, 1, 1], [0], [0]>} : vector<4x4x2xbf16>, vector<4x4x2xbf16>, vector<4x4x4xf32> -> vector<4x4x4xf32>
    "tpu.trace_stop"() : () -> ()
    %cst_31 = arith.constant dense<0xFF800000> : vector<4x4xf32>
    %113 = vector.multi_reduction <maximumf>, %112, %cst_31 [2] : vector<4x4x4xf32> to vector<4x4xf32>
    %114 = vector.shape_cast %113 : vector<4x4xf32> to vector<4x4x1xf32>
    %115 = vector.broadcast %114 : vector<4x4x1xf32> to vector<4x4x4xf32>
    %116 = arith.subf %112, %115 : vector<4x4x4xf32>
    %117 = math.exp %116 : vector<4x4x4xf32>
    %cst_32 = arith.constant dense<0.000000e+00> : vector<4x4xf32>
    %118 = vector.multi_reduction <add>, %117, %cst_32 [2] : vector<4x4x4xf32> to vector<4x4xf32>
    %119 = vector.shape_cast %118 : vector<4x4xf32> to vector<4x4x1xf32>
    %120 = tpu.reciprocal %119 {approx = true} : vector<4x4x1xf32> -> vector<4x4x1xf32>
    %121 = vector.broadcast %120 : vector<4x4x1xf32> to vector<4x4x4xf32>
    %122 = arith.mulf %117, %121 : vector<4x4x4xf32>
    %123 = arith.truncf %122 : vector<4x4x4xf32> to vector<4x4x4xbf16>
    %124 = vector.extract_strided_slice %13 {offsets = [0, 0, 12], sizes = [4, 4, 2], strides = [1, 1, 1]} : vector<4x4x16xbf16> to vector<4x4x2xbf16>
    "tpu.trace_start"() <{level = 10 : i32, message = "cqk,ckd->cqd"}> : () -> ()
    %cst_33 = arith.constant dense<0.000000e+00> : vector<4x4x2xf32>
    %125 = tpu.matmul %123, %124, %cst_33 {dimension_numbers = #tpu.dot_dimension_numbers<[2], [1], [1], [2], [0, 0, 0, 1, 1, 2], [0], [0]>} : vector<4x4x4xbf16>, vector<4x4x2xbf16>, vector<4x4x2xf32> -> vector<4x4x2xf32>
    "tpu.trace_stop"() : () -> ()
    %126 = vector.extract_strided_slice %9 {offsets = [0, 0, 14], sizes = [4, 4, 2], strides = [1, 1, 1]} : vector<4x4x16xbf16> to vector<4x4x2xbf16>
    %127 = vector.extract_strided_slice %11 {offsets = [0, 0, 14], sizes = [4, 4, 2], strides = [1, 1, 1]} : vector<4x4x16xbf16> to vector<4x4x2xbf16>
    "tpu.trace_start"() <{level = 10 : i32, message = "cqd,ckd->cqk"}> : () -> ()
    %cst_34 = arith.constant dense<0.000000e+00> : vector<4x4x4xf32>
    %128 = tpu.matmul %126, %127, %cst_34 {dimension_numbers = #tpu.dot_dimension_numbers<[2], [2], [1], [1], [0, 0, 0, 1, 1, 1], [0], [0]>} : vector<4x4x2xbf16>, vector<4x4x2xbf16>, vector<4x4x4xf32> -> vector<4x4x4xf32>
    "tpu.trace_stop"() : () -> ()
    %cst_35 = arith.constant dense<0xFF800000> : vector<4x4xf32>
    %129 = vector.multi_reduction <maximumf>, %128, %cst_35 [2] : vector<4x4x4xf32> to vector<4x4xf32>
    %130 = vector.shape_cast %129 : vector<4x4xf32> to vector<4x4x1xf32>
    %131 = vector.broadcast %130 : vector<4x4x1xf32> to vector<4x4x4xf32>
    %132 = arith.subf %128, %131 : vector<4x4x4xf32>
    %133 = math.exp %132 : vector<4x4x4xf32>
    %cst_36 = arith.constant dense<0.000000e+00> : vector<4x4xf32>
    %134 = vector.multi_reduction <add>, %133, %cst_36 [2] : vector<4x4x4xf32> to vector<4x4xf32>
    %135 = vector.shape_cast %134 : vector<4x4xf32> to vector<4x4x1xf32>
    %136 = tpu.reciprocal %135 {approx = true} : vector<4x4x1xf32> -> vector<4x4x1xf32>
    %137 = vector.broadcast %136 : vector<4x4x1xf32> to vector<4x4x4xf32>
    %138 = arith.mulf %133, %137 : vector<4x4x4xf32>
    %139 = arith.truncf %138 : vector<4x4x4xf32> to vector<4x4x4xbf16>
    %140 = vector.extract_strided_slice %13 {offsets = [0, 0, 14], sizes = [4, 4, 2], strides = [1, 1, 1]} : vector<4x4x16xbf16> to vector<4x4x2xbf16>
    "tpu.trace_start"() <{level = 10 : i32, message = "cqk,ckd->cqd"}> : () -> ()
    %cst_37 = arith.constant dense<0.000000e+00> : vector<4x4x2xf32>
    %141 = tpu.matmul %139, %140, %cst_37 {dimension_numbers = #tpu.dot_dimension_numbers<[2], [1], [1], [2], [0, 0, 0, 1, 1, 2], [0], [0]>} : vector<4x4x4xbf16>, vector<4x4x2xbf16>, vector<4x4x2xf32> -> vector<4x4x2xf32>
    "tpu.trace_stop"() : () -> ()
    %142 = tpu.concatenate %29, %45, %61, %77, %93, %109, %125, %141 in 2 : vector<4x4x2xf32>, vector<4x4x2xf32>, vector<4x4x2xf32>, vector<4x4x2xf32>, vector<4x4x2xf32>, vector<4x4x2xf32>, vector<4x4x2xf32>, vector<4x4x2xf32> -> vector<4x4x16xf32>
    %143 = vector.shape_cast %142 : vector<4x4x16xf32> to vector<16x16xf32>
    %144 = arith.truncf %143 : vector<16x16xf32> to vector<16x16xbf16>
    %c0_38 = arith.constant 0 : index
    %c0_39 = arith.constant 0 : index
    %145 = vector.load %arg5[%c0_38, %c0_39] : memref<32x16xbf16, #tpu.memory_space<vmem>>, vector<32x16xbf16>
    %cst_40 = arith.constant dense<0.000000e+00> : vector<32x16xf32>
    %146 = tpu.matmul %145, %144, %cst_40 {dimension_numbers = #tpu.dot_dimension_numbers<[1], [1], [0], [0], [0, 0, 1, 0], [], []>} : vector<32x16xbf16>, vector<16x16xbf16>, vector<32x16xf32> -> vector<32x16xf32>
    %c0_41 = arith.constant 0 : index
    %c0_42 = arith.constant 0 : index
    %147 = vector.load %arg6[%c0_41, %c0_42] : memref<32x1xf32, #tpu.memory_space<vmem>>, vector<32x1xf32>
    %148 = vector.broadcast %147 : vector<32x1xf32> to vector<32x16xf32>
    %149 = arith.addf %146, %148 : vector<32x16xf32>
    %c0_43 = arith.constant 0 : index
    %c0_44 = arith.constant 0 : index
    %c0_45 = arith.constant 0 : index
    %150 = vector.load %arg7[%c0_43, %c0_44, %c0_45] : memref<1x32x16xf32, #tpu.memory_space<vmem>>, vector<1x32x16xf32>
    %151 = vector.shape_cast %150 : vector<1x32x16xf32> to vector<32x16xf32>
    %152 = vector.shape_cast %149 : vector<32x16xf32> to vector<1x32x16xf32>
    tpu.vector_store %arg7[%c0_43, %c0_44, %c0_45], %152 {strides = array<i32>} : memref<1x32x16xf32, #tpu.memory_space<vmem>>, vector<1x32x16xf32>,
    return
  }
  func.func @transform_0(%arg0: i32, %arg1: i32) -> (i32, i32, i32) {
    %c0_i32 = arith.constant 0 : i32
    %c0_i32_0 = arith.constant 0 : i32
    return %arg0, %arg1, %c0_i32 : i32, i32, i32
  }
  func.func @transform_1(%arg0: i32, %arg1: i32) -> (i32, i32) {
    %c0_i32 = arith.constant 0 : i32
    %c0_i32_0 = arith.constant 0 : i32
    %c0_i32_1 = arith.constant 0 : i32
    return %c0_i32, %c0_i32_0 : i32, i32
  }
  func.func @transform_2(%arg0: i32, %arg1: i32) -> (i32, i32) {
    %c0_i32 = arith.constant 0 : i32
    %c0_i32_0 = arith.constant 0 : i32
    %c0_i32_1 = arith.constant 0 : i32
    return %c0_i32, %c0_i32_0 : i32, i32
  }
  func.func @transform_3(%arg0: i32, %arg1: i32) -> (i32, i32) {
    %c0_i32 = arith.constant 0 : i32
    %c0_i32_0 = arith.constant 0 : i32
    %c0_i32_1 = arith.constant 0 : i32
    return %c0_i32, %c0_i32_0 : i32, i32
  }
  func.func @transform_4(%arg0: i32, %arg1: i32) -> (i32, i32) {
    %c0_i32 = arith.constant 0 : i32
    %c0_i32_0 = arith.constant 0 : i32
    %c0_i32_1 = arith.constant 0 : i32
    return %c0_i32, %c0_i32_0 : i32, i32
  }
  func.func @transform_5(%arg0: i32, %arg1: i32) -> (i32, i32, i32) {
    %c0_i32 = arith.constant 0 : i32
    %c0_i32_0 = arith.constant 0 : i32
    return %arg0, %c0_i32, %arg1 : i32, i32, i32
  }
}

</mosaic_0001>

<bundles_post_ra>
// kernel: tpu_custom_call.1
= control target key start
LH: loop header
LB: loop body
LE: loop exit
PB: predicated region body
PF: predicated region fallthrough
CT: control target
= control target key end

     0   :  { %s5139_s18 = smov 0   ;;  %s5141_s19 = smov 0   ;;  %s5839_s0 = inlined_call_operand.vmem [shape: bf16[2,16,32], index: 0, kind: input, shape index: {}]   ;;  %s5840_s1 = inlined_call_operand.vmem [shape: bf16[32,48], index: 1, kind: input, shape index: {}]   ;;  %s5841_s2 = inlined_call_operand.vmem [shape: f32[1,48], index: 2, kind: input, shape index: {}]   ;;  %s5842_s3 = inlined_call_operand.vmem [shape: bf16[32,16], index: 3, kind: input, shape index: {}]   ;;  %s5843_s4 = inlined_call_operand.vmem [shape: f32[32,1], index: 4, kind: input, shape index: {}]   ;;  %s5844_s5 = inlined_call_operand.vmem [shape: f32[2,32,16], index: 5, kind: output, shape index: {}]  }
   0x1   :  { %s5143_s20 = smov 0  }
   0x2 LB: > { %s27_s21 = sadd.s32 1, %s5069_s19  ;;  %p4242_p0 = scmp.ge.s32.totalorder %s5073_s20, 1  ;;  %s5073_s20 = sphi %s5143_s20, %s15_s20   ;;  %s5069_s19 = sphi %s5141_s19, %s5846_s19   ;;  %s5065_s18 = sphi %s5139_s18, %s5845_s18  }
   0x3   : > { %p29_p1 = scmp.ge.s32.totalorder %s27_s21, 2  ;;  %p208_p2 = scmp.lt.s32.totalorder %s5073_s20, 3 }
   0x5   : > { %s5848_s21 = smov (%p29_p1, %s27_s21), 0  ;;  %p209_p3 = pnand %p4242_p0, %p208_p2 }
   0x6   : > { %v4918_v0 = vld [vmem:[%s5840_s1] sm:$0xff] (!%p209_p3)   ;;  %v5075_v1 = vmov (!%p209_p3), 0.0   ;;  %v4919_v2 = vld [vmem:[%s5840_s1 + $0x8] sm:$0xff] (!%p209_p3)   ;;  %vm5076_vm0 = vmmov (!%p209_p3), 0   ;;  %p244_p4 = scmp.lt.s32.totalorder (!%p209_p3), %s5065_s18, 1  ;;  %vm292_vm1 = vcmask (!%p209_p3), 261120   ;;  %v343_v6 = vlaneseq (!%p209_p3) }
   0x7   : > { %212 = sbr.rel (%p209_p3) target bundleno = 5614 (0x15ee), region = 40  ;;  %4459 = vmatprep.subr.bf16.mxu0 (!%p209_p3), %v5075_v1  ;;  %4467 = vmatprep.subr.bf16.mxu1 (!%p209_p3), %v5075_v1  ;;  %v5077_v4 = vmov (!%p209_p3), 1983009808   ;;  %v4247_v9 = vld [vmem:[%s5841_s2] ss:$0 sm:$0xff] (!%p209_p3)  ;;  %s5078_s7 = smov (!%p209_p3), 112  }
   0x8   : > { %4460 = vmatpush3.bf16.msra.mxu0 (!%p209_p3), %v4918_v0  ;;  %4463 = vmatprep.mubr.msk.bf16.mxu0 (!%p209_p3), %vm5076_vm0, %v5075_v1  ;;  %v341_v5 = vunpack.c.l.s4 (!%p209_p3), %v5077_v4  ;;  %v344_v8 = vshrl.u32 (!%p209_p3), %v343_v6, 7  ;;  %vm365_vm2 = vcmask (!%p209_p3), 15360   ;;  %vm577_vm3 = vcmask (!%p209_p3), 27648   ;;  %s5079_s8 = smov (!%p209_p3), 96   ;;  %s5080_s9 = smov (!%p209_p3), 110  }
   0x9   : > { %4461 = vmatprep.subr.bf16.mxu0 (!%p209_p3), %v5075_v1  ;;  %4469 = vmatprep.mubr.msk.bf16.mxu1 (!%p209_p3), %vm5076_vm0, %v5075_v1  ;;  %vm632_vm4 = vcmask (!%p209_p3), 1041408   ;;  %s5081_s10 = smov (!%p209_p3), 126   ;;  %vm628_vm5 = vcmask (!%p209_p3), 31744   ;;  %s5082_s11 = smov (!%p209_p3), 94   ;;  %vm4092_vm6 = vcmask (!%p209_p3), 130048   ;;  %vm4020_vm7 = vcmask (!%p209_p3), 48128  }
   0xa   : > { %v342_v7 = vunpack.c.0.s8 (!%p209_p3), %v341_v5  ;;  %s5083_s12 = smov (!%p209_p3), 108   ;;  %s5084_s13 = smov (!%p209_p3), 124   ;;  %vm4025_vm8 = vcmask (!%p209_p3), 64512   ;;  %vm4030_vm9 = vcmask (!%p209_p3), 80896   ;;  %vm4035_vm10 = vcmask (!%p209_p3), 97280  }
   0xb   : > { %s5085_s14 = smov (!%p209_p3), 92   ;;  %s5086_s15 = smov (!%p209_p3), 106   ;;  %vm4040_vm11 = vcmask (!%p209_p3), 113664  }
   0xc   : > { %4462 = vmatpush3.bf16.msra.mxu0 (!%p209_p3), %v4919_v2  ;;  %v345_v15 = vsub.s32 (!%p209_p3), %v342_v7, %v344_v8  ;;  %s5087_s16 = smov (!%p209_p3), 122   ;;  %s5088_s17 = smov (!%p209_p3), 90  }
   0xd   : > { %4473 = vmatprep.subr.bf16.mxu0 (!%p209_p3), %v5075_v1  ;;  %s5089_s22 = smov (!%p209_p3), 104   ;;  %s5090_s23 = smov (!%p209_p3), 120  }
   0xe   : > { %s5850_s18 = smov (!%p244_p4, %s5065_s18), 1  ;;  %s5091_s24 = smov 88  }
   0xf   : > { %s4323_s26 = sshll.u32 %s5850_s18, 3  ;;  %s5092_s25 = smov 102  }
  0x10   : > { %s251_s29 = scalar_lea.vmem %s5839_s0, %s4323_s26  ;;  %s5093_s26 = smov 118  }
  0x11   : > { %v4920_v3 = vld [vmem:[%s251_s29] sm:$0xff]   ;;  %s5094_s27 = smov 86   ;;  %s5095_s28 = smov 100  }
  0x12   : > { %4464 = vmatmul.mubr.msk.bf16.vlgmr.msra.gmra.mrb[0].mxu0 %vm292_vm1, %v4920_v3  ;;  %s5096_s29 = smov 116   ;;  %s5097_s30 = smov 84  }
  0x13   : > { %4475 = vmatprep.mubr.msk.bf16.mxu0 %vm5076_vm0, %v5075_v1  ;;  %s5098_s6 = smov 98  }
  0xe5   : > { %v330_v10 = vpop.f32.mrb[0].mxu0 }
  0xe6   : > { %v4465_v11 = vpop.f32.mrb[1].mxu0  ;;  %v331_v13 = vadd.f32 %v4247_v9, %v330_v10 }
  0xe7   : > { %v333_v12 = vpop.f32.mrb[2].mxu0 }
  0xe8   : > { %v334_v14 = vadd.f32 %v4247_v9, %v333_v12  ;;  %v4466_v16 = vpop.f32.mrb[3].mxu0 }
  0xea   : > { %v337_v17 = vpack.c.bf16 %v334_v14, %v331_v13  ;;  %v4252_v18 = vpack.c.bf16 %v334_v14, %v334_v14 }
  0xec   : > { %v346_v19 = vrot.slane %v337_v17, %v345_v15  ;;  %v353_v20 = vrot.slane %v4252_v18, %v345_v15 }
  0xee   : > { %v354_v21 = vcombine.high %v346_v19, %v346_v19  ;;  %v355_v22 = vcombine.high %v353_v20, %v353_v20  ;;  %v5182_v23 = vrot.slane %v346_v19, %v345_v15  ;;  %v5184_v24 = vrot.slane %v353_v20, %v345_v15 }
  0xf0   : > { %474 = vrot.lane.b32.xlu1 %v5184_v24, %s5078_s7  ;;  %363 = vrot.lane.b32.xlu0 %v5182_v23, %s5078_s7  ;;  %v5188_v25 = vrot.slane %v354_v21, %v345_v15  ;;  %v5190_v26 = vrot.slane %v355_v22, %v345_v15 }
  0xf4   : > { %529 = vrot.lane.b32.xlu1 %v5190_v26, %s5078_s7  ;;  %419 = vrot.lane.b32.xlu0 %v5188_v25, %s5078_s7  ;;  %s5099_s7 = smov 114  }
 0x162   : > { %v364_v27 = vpop.permute.xlu0 %363  ;;  %v475_v29 = vpop.permute.xlu1 %474 }
 0x163   : > { %v370_v28 = vsel %vm365_vm2, %v364_v27, 0  ;;  %v480_v32 = vsel %vm365_vm2, %v475_v29, 0 }
 0x164   : > { %4468 = vmatpush3.bf16.xpose.msra.mxu1 %v370_v28 }
 0x165   : > { %4479 = vmatprep.subr.bf16.mxu1 %v5075_v1 }
 0x166   : > { %v420_v30 = vpop.permute.xlu0 %419  ;;  %v530_v33 = vpop.permute.xlu1 %529 }
 0x167   : > { %v425_v31 = vsel %vm365_vm2, %v420_v30, 0  ;;  %v535_v34 = vsel %vm365_vm2, %v530_v33, 0 }
 0x168   : > { %4474 = vmatpush3.bf16.xpose.msra.mxu0 %v425_v31 }
 0x169   : > { %4485 = vmatprep.subr.bf16.mxu0 %v5075_v1 }
 0x16b   : > { %4470 = vmatmul.mubr.msk.bf16.vlgmr.msra.gmra.mrb[0].mxu1 %vm365_vm2, %v346_v19 }
 0x16c   : > { %4480 = vmatpush3.bf16.xpose.msra.mxu1 %v480_v32  ;;  %4481 = vmatprep.mubr.msk.bf16.mxu1 %vm5076_vm0, %v5075_v1 }
 0x16d   : > { %4491 = vmatprep.subr.bf16.mxu1 %v5075_v1 }
 0x16f   : > { %4476 = vmatmul.mubr.msk.bf16.vlgmr.msra.gmra.mrb[4].mxu0 %vm365_vm2, %v354_v21 }
 0x170   : > { %4486 = vmatpush3.bf16.xpose.msra.mxu0 %v535_v34  ;;  %4487 = vmatprep.mubr.msk.bf16.mxu0 %vm5076_vm0, %v5075_v1 }
 0x171   : > { %4497 = vmatprep.subr.bf16.mxu0 %v5075_v1 }
 0x173   : > { %4482 = vmatmul.mubr.msk.bf16.vlgmr.msra.gmra.mrb[4].mxu1 %vm365_vm2, %v353_v20 }
 0x174   : > { %4493 = vmatprep.mubr.msk.bf16.mxu1 %vm5076_vm0, %v5075_v1 }
 0x177   : > { %4488 = vmatmul.mubr.msk.bf16.vlgmr.msra.gmra.mrb[8].mxu0 %vm365_vm2, %v355_v22 }
 0x178   : > { %4499 = vmatprep.mubr.msk.bf16.mxu0 %vm5076_vm0, %v5075_v1 }
 0x23e   : > { %v406_v35 = vpop.f32.mrb[0].mxu1 }
 0x23f   : > { %v4471_v36 = vpop.f32.mrb[1].mxu1  ;;  %v578_v37 = vsel %vm577_vm3, %v406_v35, -inf }
 0x240   : > { %v409_v38 = vpop.f32.mrb[2].mxu1  ;;  %579 = vmax.xlane.f32.xlu0 %v578_v37 }
 0x241   : > { %v4472_v39 = vpop.f32.mrb[3].mxu1 }
 0x242   : > { %v461_v40 = vpop.f32.mrb[4].mxu0 }
 0x243   : > { %v4477_v41 = vpop.f32.mrb[5].mxu0  ;;  %v581_v42 = vsel %vm577_vm3, %v461_v40, -inf }
 0x244   : > { %582 = vmax.xlane.f32.xlu1 %v581_v42  ;;  %v464_v43 = vpop.f32.mrb[6].mxu0 }
 0x245   : > { %v4478_v44 = vpop.f32.mrb[7].mxu0 }
 0x246   : > { %v516_v45 = vpop.f32.mrb[4].mxu1 }
 0x247   : > { %v4483_v46 = vpop.f32.mrb[5].mxu1  ;;  %v584_v47 = vsel %vm577_vm3, %v516_v45, -inf }
 0x248   : > { %v519_v48 = vpop.f32.mrb[6].mxu1  ;;  %585 = vmax.xlane.f32.xlu0 %v584_v47 }
 0x249   : > { %v4484_v49 = vpop.f32.mrb[7].mxu1 }
 0x24a   : > { %v571_v50 = vpop.f32.mrb[8].mxu0 }
 0x24b   : > { %v4489_v51 = vpop.f32.mrb[9].mxu0  ;;  %v587_v52 = vsel %vm577_vm3, %v571_v50, -inf }
 0x24c   : > { %588 = vmax.xlane.f32.xlu0 %v587_v52  ;;  %v574_v53 = vpop.f32.mrb[10].mxu0 }
 0x24d   : > { %v4490_v54 = vpop.f32.mrb[11].mxu0 }
 0x255   : > { %626 = vrot.lane.b32.xlu1 %v5182_v23, %s5079_s8 }
 0x2cd   : > { %v580_v55 = vpop.xlane.xlu0 %579 }
 0x2ce   : > { %v590_v56 = vsub.f32 %v406_v35, %v580_v55 }
 0x2d0   : > { %v594_v57 = vmul.f32 1.442695, %v590_v56 }
 0x2d1   : > { %v583_v58 = vpop.xlane.xlu1 %582 }
 0x2d2   : > { %4923 = vpow2.f32 %v594_v57  ;;  %v591_v59 = vsub.f32 %v461_v40, %v583_v58 }
 0x2d4   : > { %v596_v60 = vmul.f32 1.442695, %v591_v59 }
 0x2d5   : > { %v627_v61 = vpop.permute.xlu1 %626  ;;  %v586_v4 = vpop.xlane.xlu0 %585 }
 0x2d6   : > { %4925 = vpow2.f32 %v596_v60  ;;  %v634_v62 = vsel %vm632_vm4, %v627_v61, 0  ;;  %v592_v6 = vsub.f32 %v516_v45, %v586_v4 }
 0x2d7   : > { %4492 = vmatpush3.bf16.msra.mxu1 %v634_v62 }
 0x2d8   : > { %4503 = vmatprep.subr.bf16.mxu1 %v5075_v1  ;;  %v598_v8 = vmul.f32 1.442695, %v592_v6 }
 0x2d9   : > { %v589_v5 = vpop.xlane.xlu0 %588 }
 0x2da   : > { %v593_v7 = vsub.f32 %v571_v50, %v589_v5  ;;  %4927 = vpow2.f32 %v598_v8 }
 0x2dc   : > { %v4924_v63 = vpop.eup %4923  ;;  %v600_v9 = vmul.f32 1.442695, %v593_v7 }
 0x2dd   : > { %v602_v0 = vsel %vm577_vm3, %v4924_v63, 0.0 }
 0x2de   : > { %603 = vadd.xlane.f32.xlu1 %v602_v0  ;;  %4929 = vpow2.f32 %v600_v9 }
 0x2e0   : > { %v4926_v2 = vpop.eup %4925 }
 0x2e1   : > { %v605_v3 = vsel %vm577_vm3, %v4926_v2, 0.0 }
 0x2e2   : > { %606 = vadd.xlane.f32.xlu0 %v605_v3 }
 0x2e4   : > { %v4928_v10 = vpop.eup %4927 }
 0x2e5   : > { %v608_v12 = vsel %vm577_vm3, %v4928_v10, 0.0 }
 0x2e8   : > { %v4930_v11 = vpop.eup %4929 }
 0x2e9   : > { %v611_v13 = vsel %vm577_vm3, %v4930_v11, 0.0 }
 0x2ef   : > { %724 = vrot.lane.b32.xlu1 %v5184_v24, %s5079_s8 }
 0x2f3   : > { %772 = vrot.lane.b32.xlu1 %v5190_v26, %s5079_s8 }
 0x2f8   : > { %676 = vrot.lane.b32.xlu0 %v5188_v25, %s5079_s8  ;;  %s5100_s8 = smov 82  }
 0x317   : > { %609 = vadd.xlane.f32.xlu1 %v608_v12  ;;  %612 = vadd.xlane.f32.xlu0 %v611_v13 }
 0x328   : > { %872 = vrot.lane.b32.xlu1 %v5188_v25, %s5080_s9 }
 0x32c   : > { %870 = vrot.lane.b32.xlu1 %v5188_v25, %s5081_s10 }
 0x32d   : > { %822 = vrot.lane.b32.xlu0 %v5182_v23, %s5080_s9 }
 0x330   : > { %972 = vrot.lane.b32.xlu1 %v5190_v26, %s5080_s9 }
 0x331   : > { %820 = vrot.lane.b32.xlu0 %v5182_v23, %s5081_s10 }
 0x334   : > { %970 = vrot.lane.b32.xlu1 %v5190_v26, %s5081_s10 }
 0x335   : > { %922 = vrot.lane.b32.xlu0 %v5184_v24, %s5080_s9  ;;  %s5101_s9 = smov 2  }
 0x339   : > { %920 = vrot.lane.b32.xlu0 %v5184_v24, %s5081_s10  ;;  %s5102_s10 = smov 4  }
 0x36b   : > { %v604_v14 = vpop.xlane.xlu1 %603 }
 0x36c   : > { %4931 = vrcp.f32 %v604_v14 }
 0x36f   : > { %v607_v15 = vpop.xlane.xlu0 %606  ;;  %v725_v19 = vpop.permute.xlu1 %724 }
 0x370   : > { %4933 = vrcp.f32 %v607_v15  ;;  %v730_v27 = vsel %vm632_vm4, %v725_v19, 0 }
 0x373   : > { %v677_v16 = vpop.permute.xlu0 %676  ;;  %v773_v29 = vpop.permute.xlu1 %772 }
 0x374   : > { %v682_v17 = vsel %vm632_vm4, %v677_v16, 0  ;;  %v778_v31 = vsel %vm632_vm4, %v773_v29, 0 }
 0x375   : > { %4498 = vmatpush3.bf16.msra.mxu0 %v682_v17 }
 0x376   : > { %v4932_v18 = vpop.eup %4931  ;;  %4509 = vmatprep.subr.bf16.mxu0 %v5075_v1 }
 0x377   : > { %v618_v20 = vmul.f32 %v4932_v18, %v4924_v63 }
 0x379   : > { %v622_v21 = vpack.c.bf16 %v618_v20, %v618_v20 }
 0x37a   : > { %v4934_v22 = vpop.eup %4933 }
 0x37b   : > { %4494 = vmatmul.mubr.msk.bf16.vlgmr.msra.gmra.mrb[8].mxu1 %vm628_vm5, %v622_v21  ;;  %v619_v28 = vmul.f32 %v4934_v22, %v4926_v2 }
 0x37c   : > { %4504 = vmatpush3.bf16.msra.mxu1 %v730_v27  ;;  %4505 = vmatprep.mubr.msk.bf16.mxu1 %vm5076_vm0, %v5075_v1 }
 0x37d   : > { %v623_v30 = vpack.c.bf16 %v619_v28, %v619_v28  ;;  %4515 = vmatprep.subr.bf16.mxu1 %v5075_v1 }
 0x37f   : > { %4500 = vmatmul.mubr.msk.bf16.vlgmr.msra.gmra.mrb[12].mxu0 %vm628_vm5, %v623_v30 }
 0x380   : > { %4510 = vmatpush3.bf16.msra.mxu0 %v778_v31  ;;  %4511 = vmatprep.mubr.msk.bf16.mxu0 %vm5076_vm0, %v5075_v1 }
 0x381   : > { %4521 = vmatprep.subr.bf16.mxu0 %v5075_v1 }
 0x3a4   : > { %v610_v32 = vpop.xlane.xlu1 %609  ;;  %v613_v33 = vpop.xlane.xlu0 %612 }
 0x3a5   : > { %4935 = vrcp.f32 %v610_v32 }
 0x3a6   : > { %4937 = vrcp.f32 %v613_v33 }
 0x3a8   : > { %v823_v34 = vpop.permute.xlu0 %822  ;;  %v873_v35 = vpop.permute.xlu1 %872 }
 0x3a9   : > { %v828_v43 = vsel %vm365_vm2, %v823_v34, 0  ;;  %v878_v45 = vsel %vm365_vm2, %v873_v35, 0 }
 0x3ac   : > { %v821_v41 = vpop.permute.xlu0 %820  ;;  %v871_v44 = vpop.permute.xlu1 %870 }
 0x3af   : > { %v4936_v36 = vpop.eup %4935 }
 0x3b0   : > { %v4938_v37 = vpop.eup %4937  ;;  %v620_v38 = vmul.f32 %v4936_v36, %v4928_v10  ;;  %v923_v46 = vpop.permute.xlu0 %922 }
 0x3b1   : > { %v621_v39 = vmul.f32 %v4938_v37, %v4930_v11  ;;  %v973_v47 = vpop.permute.xlu1 %972  ;;  %v928_v48 = vsel %vm365_vm2, %v923_v46, 0 }
 0x3b2   : > { %v624_v40 = vpack.c.bf16 %v620_v38, %v620_v38  ;;  %v978_v49 = vsel %vm365_vm2, %v973_v47, 0 }
 0x3b3   : > { %v625_v42 = vpack.c.bf16 %v621_v39, %v621_v39 }
 0x3b4   : > { %4506 = vmatmul.mubr.msk.bf16.vlgmr.msra.gmra.mrb[12].mxu1 %vm628_vm5, %v624_v40  ;;  %v921_v50 = vpop.permute.xlu0 %920 }
 0x3b5   : > { %4512 = vmatmul.mubr.msk.bf16.vlgmr.msra.gmra.mrb[16].mxu0 %vm628_vm5, %v625_v42  ;;  %4516 = vmatpush3.bf16.xpose.msra.mxu1 %v828_v43  ;;  %v971_v51 = vpop.permute.xlu1 %970 }
 0x3b6   : > { %4522 = vmatpush3.bf16.xpose.msra.mxu0 %v878_v45  ;;  %4517 = vmatprep.mubr.msk.bf16.mxu1 %vm5076_vm0, %v5075_v1 }
 0x3b7   : > { %4523 = vmatprep.mubr.msk.bf16.mxu0 %vm5076_vm0, %v5075_v1  ;;  %4527 = vmatprep.subr.bf16.mxu1 %v5075_v1 }
 0x3b8   : > { %4533 = vmatprep.subr.bf16.mxu0 %v5075_v1 }
 0x3bc   : > { %4518 = vmatmul.mubr.msk.bf16.vlgmr.msra.gmra.mrb[16].mxu1 %vm365_vm2, %v821_v41 }
 0x3bd   : > { %4524 = vmatmul.mubr.msk.bf16.vlgmr.msra.gmra.mrb[20].mxu0 %vm365_vm2, %v871_v44  ;;  %4528 = vmatpush3.bf16.xpose.msra.mxu1 %v928_v48 }
 0x3be   : > { %4534 = vmatpush3.bf16.xpose.msra.mxu0 %v978_v49  ;;  %4529 = vmatprep.mubr.msk.bf16.mxu1 %vm5076_vm0, %v5075_v1 }
 0x3bf   : > { %4535 = vmatprep.mubr.msk.bf16.mxu0 %vm5076_vm0, %v5075_v1  ;;  %4539 = vmatprep.subr.bf16.mxu1 %v5075_v1 }
 0x3c0   : > { %4545 = vmatprep.subr.bf16.mxu0 %v5075_v1 }
 0x3c4   : > { %4530 = vmatmul.mubr.msk.bf16.vlgmr.msra.gmra.mrb[20].mxu1 %vm365_vm2, %v921_v50 }
 0x3c5   : > { %4536 = vmatmul.mubr.msk.bf16.vlgmr.msra.gmra.mrb[24].mxu0 %vm365_vm2, %v971_v51  ;;  %4541 = vmatprep.mubr.msk.bf16.mxu1 %vm5076_vm0, %v5075_v1 }
 0x3c6   : > { %4547 = vmatprep.mubr.msk.bf16.mxu0 %vm5076_vm0, %v5075_v1 }
 0x44e   : > { %v5274_v52 = vpop.f32.mrb[8].mxu1 }
 0x44f   : > { %v4495_v53 = vpop.f32.mrb[9].mxu1 }
 0x450   : > { %v673_v54 = vpop.f32.mrb[10].mxu1 }
 0x451   : > { %v4496_v55 = vpop.f32.mrb[11].mxu1 }
 0x452   : > { %v5276_v56 = vpop.f32.mrb[12].mxu0 }
 0x453   : > { %v4501_v57 = vpop.f32.mrb[13].mxu0 }
 0x454   : > { %v721_v58 = vpop.f32.mrb[14].mxu0 }
 0x455   : > { %v4502_v59 = vpop.f32.mrb[15].mxu0 }
 0x487   : > { %v5278_v60 = vpop.f32.mrb[12].mxu1 }
 0x488   : > { %v5280_v61 = vpop.f32.mrb[16].mxu0  ;;  %v4507_v62 = vpop.f32.mrb[13].mxu1 }
 0x489   : > { %v4513_v63 = vpop.f32.mrb[17].mxu0  ;;  %v769_v0 = vpop.f32.mrb[14].mxu1 }
 0x48a   : > { %v817_v2 = vpop.f32.mrb[18].mxu0  ;;  %v4508_v3 = vpop.f32.mrb[15].mxu1 }
 0x48b   : > { %v4514_v4 = vpop.f32.mrb[19].mxu0 }
 0x48f   : > { %v864_v5 = vpop.f32.mrb[16].mxu1 }
 0x490   : > { %v914_v6 = vpop.f32.mrb[20].mxu0  ;;  %v4519_v7 = vpop.f32.mrb[17].mxu1  ;;  %v1020_v8 = vsel %vm577_vm3, %v864_v5, -inf }
 0x491   : > { %v4525_v9 = vpop.f32.mrb[21].mxu0  ;;  %1021 = vmax.xlane.f32.xlu0 %v1020_v8  ;;  %v867_v10 = vpop.f32.mrb[18].mxu1  ;;  %v1023_v11 = vsel %vm577_vm3, %v914_v6, -inf }
 0x492   : > { %1024 = vmax.xlane.f32.xlu1 %v1023_v11  ;;  %v917_v12 = vpop.f32.mrb[22].mxu0  ;;  %v4520_v13 = vpop.f32.mrb[19].mxu1 }
 0x493   : > { %v4526_v14 = vpop.f32.mrb[23].mxu0 }
 0x497   : > { %v964_v15 = vpop.f32.mrb[20].mxu1 }
 0x498   : > { %v1014_v16 = vpop.f32.mrb[24].mxu0  ;;  %v4531_v17 = vpop.f32.mrb[21].mxu1  ;;  %v1026_v18 = vsel %vm577_vm3, %v964_v15, -inf }
 0x499   : > { %v4537_v19 = vpop.f32.mrb[25].mxu0  ;;  %1027 = vmax.xlane.f32.xlu0 %v1026_v18  ;;  %v967_v20 = vpop.f32.mrb[22].mxu1  ;;  %v1029_v28 = vsel %vm577_vm3, %v1014_v16, -inf }
 0x49a   : > { %v1017_v21 = vpop.f32.mrb[26].mxu0  ;;  %v4532_v22 = vpop.f32.mrb[23].mxu1 }
 0x49b   : > { %v4538_v27 = vpop.f32.mrb[27].mxu0 }
 0x49d   : > { %1030 = vmax.xlane.f32.xlu0 %v1029_v28 }
 0x4a3   : > { %1068 = vrot.lane.b32.xlu1 %v5182_v23, %s5082_s11 }
 0x51e   : > { %v1022_v29 = vpop.xlane.xlu0 %1021 }
 0x51f   : > { %v1032_v30 = vsub.f32 %v864_v5, %v1022_v29  ;;  %v1025_v31 = vpop.xlane.xlu1 %1024 }
 0x520   : > { %v1033_v32 = vsub.f32 %v914_v6, %v1025_v31 }
 0x521   : > { %v1036_v33 = vmul.f32 1.442695, %v1032_v30 }
 0x522   : > { %v1038_v34 = vmul.f32 1.442695, %v1033_v32 }
 0x523   : > { %4939 = vpow2.f32 %v1036_v33  ;;  %v1069_v35 = vpop.permute.xlu1 %1068 }
 0x524   : > { %4941 = vpow2.f32 %v1038_v34  ;;  %v1074_v36 = vsel %vm632_vm4, %v1069_v35, 0 }
 0x525   : > { %4540 = vmatpush3.bf16.msra.mxu1 %v1074_v36 }
 0x526   : > { %4551 = vmatprep.subr.bf16.mxu1 %v5075_v1  ;;  %v1028_v41 = vpop.xlane.xlu0 %1027 }
 0x527   : > { %v1034_v44 = vsub.f32 %v964_v15, %v1028_v41 }
 0x529   : > { %v1040_v46 = vmul.f32 1.442695, %v1034_v44 }
 0x52a   : > { %v1031_v42 = vpop.xlane.xlu0 %1030 }
 0x52b   : > { %v1035_v43 = vsub.f32 %v1014_v16, %v1031_v42 }
 0x52d   : > { %v4940_v37 = vpop.eup %4939  ;;  %v1042_v45 = vmul.f32 1.442695, %v1035_v43 }
 0x52e   : > { %v4942_v38 = vpop.eup %4941  ;;  %v1044_v39 = vsel %vm577_vm3, %v4940_v37, 0.0 }
 0x52f   : > { %1045 = vadd.xlane.f32.xlu1 %v1044_v39  ;;  %v1047_v40 = vsel %vm577_vm3, %v4942_v38, 0.0  ;;  %4943 = vpow2.f32 %v1042_v45 }
 0x530   : > { %1048 = vadd.xlane.f32.xlu0 %v1047_v40  ;;  %4945 = vpow2.f32 %v1040_v46 }
 0x539   : > { %v4944_v47 = vpop.eup %4943 }
 0x53a   : > { %v4946_v48 = vpop.eup %4945  ;;  %v1053_v49 = vsel %vm577_vm3, %v4944_v47, 0.0 }
 0x53b   : > { %v1050_v50 = vsel %vm577_vm3, %v4946_v48, 0.0 }
 0x540   : > { %1164 = vrot.lane.b32.xlu1 %v5184_v24, %s5082_s11 }
 0x544   : > { %1212 = vrot.lane.b32.xlu1 %v5190_v26, %s5082_s11 }
 0x546   : > { %1116 = vrot.lane.b32.xlu0 %v5188_v25, %s5082_s11  ;;  %s5103_s11 = smov 6  }
 0x565   : > { %1054 = vadd.xlane.f32.xlu0 %v1053_v49 }
 0x568   : > { %1051 = vadd.xlane.f32.xlu1 %v1050_v50 }
 0x579   : > { %1312 = vrot.lane.b32.xlu1 %v5188_v25, %s5083_s12 }
 0x57b   : > { %1262 = vrot.lane.b32.xlu0 %v5182_v23, %s5083_s12 }
 0x57d   : > { %1310 = vrot.lane.b32.xlu1 %v5188_v25, %s5084_s13 }
 0x57f   : > { %1260 = vrot.lane.b32.xlu0 %v5182_v23, %s5084_s13 }
 0x581   : > { %1412 = vrot.lane.b32.xlu1 %v5190_v26, %s5083_s12 }
 0x583   : > { %1362 = vrot.lane.b32.xlu0 %v5184_v24, %s5083_s12  ;;  %s5104_s12 = smov 8  }
 0x585   : > { %1410 = vrot.lane.b32.xlu1 %v5190_v26, %s5084_s13 }
 0x587   : > { %1360 = vrot.lane.b32.xlu0 %v5184_v24, %s5084_s13  ;;  %s5105_s13 = smov 10  }
 0x5bc   : > { %v1046_v51 = vpop.xlane.xlu1 %1045 }
 0x5bd   : > { %4947 = vrcp.f32 %v1046_v51  ;;  %v1049_v53 = vpop.xlane.xlu0 %1048 }
 0x5be   : > { %4949 = vrcp.f32 %v1049_v53 }
 0x5c0   : > { %v1165_v57 = vpop.permute.xlu1 %1164 }
 0x5c1   : > { %v1117_v54 = vpop.permute.xlu0 %1116  ;;  %v1170_v4 = vsel %vm632_vm4, %v1165_v57, 0 }
 0x5c2   : > { %v1122_v55 = vsel %vm632_vm4, %v1117_v54, 0 }
 0x5c3   : > { %4546 = vmatpush3.bf16.msra.mxu0 %v1122_v55 }
 0x5c4   : > { %4557 = vmatprep.subr.bf16.mxu0 %v5075_v1  ;;  %v1213_v0 = vpop.permute.xlu1 %1212 }
 0x5c5   : > { %v1218_v5 = vsel %vm632_vm4, %v1213_v0, 0 }
 0x5c7   : > { %v4948_v58 = vpop.eup %4947 }
 0x5c8   : > { %v4950_v59 = vpop.eup %4949  ;;  %v1060_v62 = vmul.f32 %v4948_v58, %v4940_v37 }
 0x5c9   : > { %v1061_v63 = vmul.f32 %v4950_v59, %v4942_v38 }
 0x5ca   : > { %v1064_v2 = vpack.c.bf16 %v1060_v62, %v1060_v62 }
 0x5cb   : > { %v1065_v3 = vpack.c.bf16 %v1061_v63, %v1061_v63 }
 0x5cc   : > { %4542 = vmatmul.mubr.msk.bf16.vlgmr.msra.gmra.mrb[24].mxu1 %vm628_vm5, %v1064_v2 }
 0x5cd   : > { %4548 = vmatmul.mubr.msk.bf16.vlgmr.msra.gmra.mrb[28].mxu0 %vm628_vm5, %v1065_v3  ;;  %4552 = vmatpush3.bf16.msra.mxu1 %v1170_v4 }
 0x5ce   : > { %4558 = vmatpush3.bf16.msra.mxu0 %v1218_v5  ;;  %4559 = vmatprep.mubr.msk.bf16.mxu0 %vm5076_vm0, %v5075_v1 }
 0x5cf   : > { %4569 = vmatprep.subr.bf16.mxu0 %v5075_v1  ;;  %4553 = vmatprep.mubr.msk.bf16.mxu1 %vm5076_vm0, %v5075_v1 }
 0x5d0   : > { %4563 = vmatprep.subr.bf16.mxu1 %v5075_v1 }
 0x5f2   : > { %v1055_v6 = vpop.xlane.xlu0 %1054 }
 0x5f3   : > { %4951 = vrcp.f32 %v1055_v6 }
 0x5f5   : > { %v1052_v7 = vpop.xlane.xlu1 %1051 }
 0x5f6   : > { %4953 = vrcp.f32 %v1052_v7  ;;  %v1263_v10 = vpop.permute.xlu0 %1262 }
 0x5f7   : > { %v1268_v19 = vsel %vm365_vm2, %v1263_v10, 0 }
 0x5f9   : > { %v1313_v8 = vpop.permute.xlu1 %1312 }
 0x5fa   : > { %v1318_v16 = vsel %vm365_vm2, %v1313_v8, 0  ;;  %v1261_v18 = vpop.permute.xlu0 %1260 }
 0x5fd   : > { %v4952_v9 = vpop.eup %4951  ;;  %v1311_v14 = vpop.permute.xlu1 %1310 }
 0x5fe   : > { %v1063_v11 = vmul.f32 %v4952_v9, %v4944_v47  ;;  %v1363_v21 = vpop.permute.xlu0 %1362 }
 0x5ff   : > { %v1368_v27 = vsel %vm365_vm2, %v1363_v21, 0 }
 0x600   : > { %v4954_v12 = vpop.eup %4953  ;;  %v1067_v13 = vpack.c.bf16 %v1063_v11, %v1063_v11 }
 0x601   : > { %v1062_v15 = vmul.f32 %v4954_v12, %v4946_v48  ;;  %v1413_v20 = vpop.permute.xlu1 %1412 }
 0x602   : > { %4560 = vmatmul.mubr.msk.bf16.vlgmr.msra.gmra.mrb[32].mxu0 %vm628_vm5, %v1067_v13  ;;  %v1418_v22 = vsel %vm365_vm2, %v1413_v20, 0  ;;  %v1361_v29 = vpop.permute.xlu0 %1360 }
 0x603   : > { %4570 = vmatpush3.bf16.xpose.msra.mxu0 %v1318_v16  ;;  %v1066_v17 = vpack.c.bf16 %v1062_v15, %v1062_v15  ;;  %4571 = vmatprep.mubr.msk.bf16.mxu0 %vm5076_vm0, %v5075_v1 }
 0x604   : > { %4581 = vmatprep.subr.bf16.mxu0 %v5075_v1 }
 0x605   : > { %4554 = vmatmul.mubr.msk.bf16.vlgmr.msra.gmra.mrb[28].mxu1 %vm628_vm5, %v1066_v17  ;;  %v1411_v28 = vpop.permute.xlu1 %1410 }
 0x606   : > { %4564 = vmatpush3.bf16.xpose.msra.mxu1 %v1268_v19  ;;  %4565 = vmatprep.mubr.msk.bf16.mxu1 %vm5076_vm0, %v5075_v1 }
 0x607   : > { %4575 = vmatprep.subr.bf16.mxu1 %v5075_v1 }
 0x60a   : > { %4572 = vmatmul.mubr.msk.bf16.vlgmr.msra.gmra.mrb[36].mxu0 %vm365_vm2, %v1311_v14 }
 0x60b   : > { %4582 = vmatpush3.bf16.xpose.msra.mxu0 %v1418_v22  ;;  %4583 = vmatprep.mubr.msk.bf16.mxu0 %vm5076_vm0, %v5075_v1 }
 0x60c   : > { %4593 = vmatprep.subr.bf16.mxu0 %v5075_v1 }
 0x60d   : > { %4566 = vmatmul.mubr.msk.bf16.vlgmr.msra.gmra.mrb[32].mxu1 %vm365_vm2, %v1261_v18 }
 0x60e   : > { %4576 = vmatpush3.bf16.xpose.msra.mxu1 %v1368_v27  ;;  %4577 = vmatprep.mubr.msk.bf16.mxu1 %vm5076_vm0, %v5075_v1 }
 0x60f   : > { %4587 = vmatprep.subr.bf16.mxu1 %v5075_v1 }
 0x612   : > { %4584 = vmatmul.mubr.msk.bf16.vlgmr.msra.gmra.mrb[40].mxu0 %vm365_vm2, %v1411_v28 }
 0x613   : > { %4595 = vmatprep.mubr.msk.bf16.mxu0 %vm5076_vm0, %v5075_v1 }
 0x615   : > { %4578 = vmatmul.mubr.msk.bf16.vlgmr.msra.gmra.mrb[36].mxu1 %vm365_vm2, %v1361_v29 }
 0x616   : > { %4589 = vmatprep.mubr.msk.bf16.mxu1 %vm5076_vm0, %v5075_v1 }
 0x69f   : > { %v5342_v30 = vpop.f32.mrb[24].mxu1 }
 0x6a0   : > { %v5344_v31 = vpop.f32.mrb[28].mxu0  ;;  %v4543_v32 = vpop.f32.mrb[25].mxu1 }
 0x6a1   : > { %v4549_v33 = vpop.f32.mrb[29].mxu0  ;;  %v1113_v34 = vpop.f32.mrb[26].mxu1 }
 0x6a2   : > { %v1161_v35 = vpop.f32.mrb[30].mxu0  ;;  %v4544_v36 = vpop.f32.mrb[27].mxu1 }
 0x6a3   : > { %v4550_v37 = vpop.f32.mrb[31].mxu0 }
 0x6d5   : > { %v5346_v38 = vpop.f32.mrb[32].mxu0 }
 0x6d6   : > { %v4561_v39 = vpop.f32.mrb[33].mxu0 }
 0x6d7   : > { %v1257_v40 = vpop.f32.mrb[34].mxu0 }
 0x6d8   : > { %v4562_v41 = vpop.f32.mrb[35].mxu0  ;;  %v5348_v42 = vpop.f32.mrb[28].mxu1 }
 0x6d9   : > { %v4555_v43 = vpop.f32.mrb[29].mxu1 }
 0x6da   : > { %v1209_v44 = vpop.f32.mrb[30].mxu1 }
 0x6db   : > { %v4556_v45 = vpop.f32.mrb[31].mxu1 }
 0x6dd   : > { %v1354_v46 = vpop.f32.mrb[36].mxu0 }
 0x6de   : > { %v4573_v47 = vpop.f32.mrb[37].mxu0  ;;  %v1463_v48 = vsel %vm577_vm3, %v1354_v46, -inf }
 0x6df   : > { %1464 = vmax.xlane.f32.xlu1 %v1463_v48  ;;  %v1357_v49 = vpop.f32.mrb[38].mxu0 }
 0x6e0   : > { %v4574_v50 = vpop.f32.mrb[39].mxu0  ;;  %v1304_v51 = vpop.f32.mrb[32].mxu1 }
 0x6e1   : > { %v4567_v53 = vpop.f32.mrb[33].mxu1  ;;  %v1460_v54 = vsel %vm577_vm3, %v1304_v51, -inf }
 0x6e2   : > { %1461 = vmax.xlane.f32.xlu0 %v1460_v54  ;;  %v1307_v55 = vpop.f32.mrb[34].mxu1 }
 0x6e3   : > { %v4568_v57 = vpop.f32.mrb[35].mxu1 }
 0x6e5   : > { %v1454_v58 = vpop.f32.mrb[40].mxu0 }
 0x6e6   : > { %v4585_v59 = vpop.f32.mrb[41].mxu0  ;;  %v1469_v6 = vsel %vm577_vm3, %v1454_v58, -inf }
 0x6e7   : > { %v1457_v62 = vpop.f32.mrb[42].mxu0 }
 0x6e8   : > { %v4586_v63 = vpop.f32.mrb[43].mxu0  ;;  %v1404_v0 = vpop.f32.mrb[36].mxu1 }
 0x6e9   : > { %v4579_v2 = vpop.f32.mrb[37].mxu1  ;;  %v1466_v3 = vsel %vm577_vm3, %v1404_v0, -inf }
 0x6ea   : > { %1467 = vmax.xlane.f32.xlu0 %v1466_v3  ;;  %v1407_v4 = vpop.f32.mrb[38].mxu1 }
 0x6eb   : > { %v4580_v5 = vpop.f32.mrb[39].mxu1 }
 0x6ee   : > { %1470 = vmax.xlane.f32.xlu0 %v1469_v6 }
 0x6f0   : > { %1508 = vrot.lane.b32.xlu1 %v5182_v23, %s5085_s14 }
 0x76c   : > { %v1465_v7 = vpop.xlane.xlu1 %1464 }
 0x76d   : > { %v1473_v8 = vsub.f32 %v1354_v46, %v1465_v7 }
 0x76f   : > { %v1478_v9 = vmul.f32 1.442695, %v1473_v8  ;;  %v1462_v10 = vpop.xlane.xlu0 %1461 }
 0x770   : > { %v1472_v11 = vsub.f32 %v1304_v51, %v1462_v10  ;;  %v1509_v12 = vpop.permute.xlu1 %1508 }
 0x771   : > { %4955 = vpow2.f32 %v1478_v9  ;;  %v1514_v13 = vsel %vm632_vm4, %v1509_v12, 0 }
 0x772   : > { %v1476_v14 = vmul.f32 1.442695, %v1472_v11  ;;  %4588 = vmatpush3.bf16.msra.mxu1 %v1514_v13 }
 0x773   : > { %4599 = vmatprep.subr.bf16.mxu1 %v5075_v1 }
 0x774   : > { %4957 = vpow2.f32 %v1476_v14 }
 0x777   : > { %v1468_v19 = vpop.xlane.xlu0 %1467 }
 0x778   : > { %v1474_v27 = vsub.f32 %v1404_v0, %v1468_v19 }
 0x77a   : > { %v1480_v28 = vmul.f32 1.442695, %v1474_v27 }
 0x77b   : > { %v4956_v15 = vpop.eup %4955  ;;  %v1471_v20 = vpop.xlane.xlu0 %1470 }
 0x77c   : > { %v1487_v16 = vsel %vm577_vm3, %v4956_v15, 0.0  ;;  %v1475_v21 = vsub.f32 %v1454_v58, %v1471_v20 }
 0x77d   : > { %1488 = vadd.xlane.f32.xlu0 %v1487_v16 }
 0x77e   : > { %v4958_v17 = vpop.eup %4957  ;;  %v1482_v22 = vmul.f32 1.442695, %v1475_v21 }
 0x77f   : > { %v1484_v18 = vsel %vm577_vm3, %v4958_v17, 0.0 }
 0x780   : > { %1485 = vadd.xlane.f32.xlu1 %v1484_v18  ;;  %4959 = vpow2.f32 %v1482_v22 }
 0x781   : > { %4961 = vpow2.f32 %v1480_v28 }
 0x78a   : > { %v4960_v29 = vpop.eup %4959 }
 0x78b   : > { %v1493_v32 = vsel %vm577_vm3, %v4960_v29, 0.0  ;;  %v4962_v33 = vpop.eup %4961 }
 0x78c   : > { %v1490_v34 = vsel %vm577_vm3, %v4962_v33, 0.0 }
 0x791   : > { %1604 = vrot.lane.b32.xlu1 %v5184_v24, %s5085_s14 }
 0x793   : > { %1556 = vrot.lane.b32.xlu0 %v5188_v25, %s5085_s14 }
 0x795   : > { %1652 = vrot.lane.b32.xlu1 %v5190_v26, %s5085_s14  ;;  %s5106_s14 = smov 12  }
 0x7b2   : > { %1494 = vadd.xlane.f32.xlu0 %v1493_v32 }
 0x7b9   : > { %1491 = vadd.xlane.f32.xlu1 %v1490_v34 }
 0x7c8   : > { %1702 = vrot.lane.b32.xlu0 %v5182_v23, %s5086_s15 }
 0x7ca   : > { %1752 = vrot.lane.b32.xlu1 %v5188_v25, %s5086_s15 }
 0x7cc   : > { %1700 = vrot.lane.b32.xlu0 %v5182_v23, %s5087_s16 }
 0x7ce   : > { %1750 = vrot.lane.b32.xlu1 %v5188_v25, %s5087_s16 }
 0x7d0   : > { %1802 = vrot.lane.b32.xlu0 %v5184_v24, %s5086_s15 }
 0x7d2   : > { %1852 = vrot.lane.b32.xlu1 %v5190_v26, %s5086_s15  ;;  %s5107_s15 = smov 14  }
 0x7d4   : > { %1800 = vrot.lane.b32.xlu0 %v5184_v24, %s5087_s16 }
 0x7d6   : > { %1850 = vrot.lane.b32.xlu1 %v5190_v26, %s5087_s16 }
 0x80a   : > { %v1489_v35 = vpop.xlane.xlu0 %1488 }
 0x80b   : > { %4963 = vrcp.f32 %v1489_v35 }
 0x80d   : > { %v1486_v36 = vpop.xlane.xlu1 %1485 }
 0x80e   : > { %4965 = vrcp.f32 %v1486_v36  ;;  %v1557_v37 = vpop.permute.xlu0 %1556 }
 0x80f   : > { %v1562_v39 = vsel %vm632_vm4, %v1557_v37, 0 }
 0x810   : > { %4594 = vmatpush3.bf16.msra.mxu0 %v1562_v39 }
 0x811   : > { %v1605_v40 = vpop.permute.xlu1 %1604  ;;  %4605 = vmatprep.subr.bf16.mxu0 %v5075_v1 }
 0x812   : > { %v1610_v50 = vsel %vm632_vm4, %v1605_v40, 0 }
 0x815   : > { %v4964_v41 = vpop.eup %4963  ;;  %v1653_v44 = vpop.permute.xlu1 %1652 }
 0x816   : > { %v1501_v43 = vmul.f32 %v4964_v41, %v4956_v15  ;;  %v1658_v48 = vsel %vm632_vm4, %v1653_v44, 0 }
 0x818   : > { %v4966_v45 = vpop.eup %4965  ;;  %v1505_v46 = vpack.c.bf16 %v1501_v43, %v1501_v43 }
 0x819   : > { %v1500_v47 = vmul.f32 %v4966_v45, %v4958_v17 }
 0x81a   : > { %4596 = vmatmul.mubr.msk.bf16.vlgmr.msra.gmra.mrb[44].mxu0 %vm628_vm5, %v1505_v46 }
 0x81b   : > { %4606 = vmatpush3.bf16.msra.mxu0 %v1658_v48  ;;  %v1504_v49 = vpack.c.bf16 %v1500_v47, %v1500_v47  ;;  %4607 = vmatprep.mubr.msk.bf16.mxu0 %vm5076_vm0, %v5075_v1 }
 0x81c   : > { %4617 = vmatprep.subr.bf16.mxu0 %v5075_v1 }
 0x81d   : > { %4590 = vmatmul.mubr.msk.bf16.vlgmr.msra.gmra.mrb[40].mxu1 %vm628_vm5, %v1504_v49 }
 0x81e   : > { %4600 = vmatpush3.bf16.msra.mxu1 %v1610_v50  ;;  %4601 = vmatprep.mubr.msk.bf16.mxu1 %vm5076_vm0, %v5075_v1 }
 0x81f   : > { %4611 = vmatprep.subr.bf16.mxu1 %v5075_v1 }
 0x83f   : > { %v1495_v51 = vpop.xlane.xlu0 %1494 }
 0x840   : > { %4967 = vrcp.f32 %v1495_v51 }
 0x843   : > { %v1703_v62 = vpop.permute.xlu0 %1702 }
 0x844   : > { %v1708_v6 = vsel %vm365_vm2, %v1703_v62, 0 }
 0x846   : > { %v1492_v53 = vpop.xlane.xlu1 %1491 }
 0x847   : > { %4969 = vrcp.f32 %v1492_v53  ;;  %v1701_v5 = vpop.permute.xlu0 %1700 }
 0x84a   : > { %v4968_v54 = vpop.eup %4967  ;;  %v1753_v55 = vpop.permute.xlu1 %1752 }
 0x84b   : > { %v1503_v57 = vmul.f32 %v4968_v54, %v4960_v29  ;;  %v1758_v63 = vsel %vm365_vm2, %v1753_v55, 0  ;;  %v1803_v8 = vpop.permute.xlu0 %1802 }
 0x84c   : > { %v1808_v9 = vsel %vm365_vm2, %v1803_v8, 0 }
 0x84d   : > { %v1507_v58 = vpack.c.bf16 %v1503_v57, %v1503_v57 }
 0x84e   : > { %v1751_v59 = vpop.permute.xlu1 %1750 }
 0x84f   : > { %4608 = vmatmul.mubr.msk.bf16.vlgmr.msra.gmra.mrb[48].mxu0 %vm628_vm5, %v1507_v58  ;;  %v1801_v11 = vpop.permute.xlu0 %1800 }
 0x850   : > { %4618 = vmatpush3.bf16.xpose.msra.mxu0 %v1758_v63  ;;  %4619 = vmatprep.mubr.msk.bf16.mxu0 %vm5076_vm0, %v5075_v1 }
 0x851   : > { %v4970_v0 = vpop.eup %4969  ;;  %4629 = vmatprep.subr.bf16.mxu0 %v5075_v1 }
 0x852   : > { %v1502_v2 = vmul.f32 %v4970_v0, %v4962_v33  ;;  %v1853_v3 = vpop.permute.xlu1 %1852 }
 0x853   : > { %v1858_v7 = vsel %vm365_vm2, %v1853_v3, 0 }
 0x854   : > { %v1506_v4 = vpack.c.bf16 %v1502_v2, %v1502_v2 }
 0x856   : > { %4602 = vmatmul.mubr.msk.bf16.vlgmr.msra.gmra.mrb[44].mxu1 %vm628_vm5, %v1506_v4  ;;  %v1851_v10 = vpop.permute.xlu1 %1850 }
 0x857   : > { %4612 = vmatpush3.bf16.xpose.msra.mxu1 %v1708_v6  ;;  %4620 = vmatmul.mubr.msk.bf16.vlgmr.msra.gmra.mrb[52].mxu0 %vm365_vm2, %v1751_v59 }
 0x858   : > { %4630 = vmatpush3.bf16.xpose.msra.mxu0 %v1858_v7  ;;  %4613 = vmatprep.mubr.msk.bf16.mxu1 %vm5076_vm0, %v5075_v1 }
 0x859   : > { %4623 = vmatprep.subr.bf16.mxu1 %v5075_v1  ;;  %4631 = vmatprep.mubr.msk.bf16.mxu0 %vm5076_vm0, %v5075_v1 }
 0x85a   : > { %4641 = vmatprep.subr.bf16.mxu0 %v5075_v1 }
 0x85e   : > { %4614 = vmatmul.mubr.msk.bf16.vlgmr.msra.gmra.mrb[48].mxu1 %vm365_vm2, %v1701_v5 }
 0x85f   : > { %4624 = vmatpush3.bf16.xpose.msra.mxu1 %v1808_v9  ;;  %4632 = vmatmul.mubr.msk.bf16.vlgmr.msra.gmra.mrb[56].mxu0 %vm365_vm2, %v1851_v10 }
 0x860   : > { %4625 = vmatprep.mubr.msk.bf16.mxu1 %vm5076_vm0, %v5075_v1  ;;  %4635 = vmatprep.subr.bf16.mxu1 %v5075_v1 }
 0x861   : > { %4643 = vmatprep.mubr.msk.bf16.mxu0 %vm5076_vm0, %v5075_v1 }
 0x866   : > { %4626 = vmatmul.mubr.msk.bf16.vlgmr.msra.gmra.mrb[52].mxu1 %vm365_vm2, %v1801_v11 }
 0x867   : > { %4637 = vmatprep.mubr.msk.bf16.mxu1 %vm5076_vm0, %v5075_v1 }
 0x8ed   : > { %v5410_v12 = vpop.f32.mrb[44].mxu0 }
 0x8ee   : > { %v4597_v13 = vpop.f32.mrb[45].mxu0 }
 0x8ef   : > { %v1601_v14 = vpop.f32.mrb[46].mxu0 }
 0x8f0   : > { %v4598_v15 = vpop.f32.mrb[47].mxu0  ;;  %v5412_v16 = vpop.f32.mrb[40].mxu1 }
 0x8f1   : > { %v4591_v17 = vpop.f32.mrb[41].mxu1 }
 0x8f2   : > { %v1553_v18 = vpop.f32.mrb[42].mxu1 }
 0x8f3   : > { %v4592_v19 = vpop.f32.mrb[43].mxu1 }
 0x922   : > { %v5414_v20 = vpop.f32.mrb[48].mxu0 }
 0x923   : > { %v4609_v21 = vpop.f32.mrb[49].mxu0 }
 0x924   : > { %v1697_v22 = vpop.f32.mrb[50].mxu0 }
 0x925   : > { %v4610_v27 = vpop.f32.mrb[51].mxu0 }
 0x929   : > { %v5416_v28 = vpop.f32.mrb[44].mxu1 }
 0x92a   : > { %v1794_v29 = vpop.f32.mrb[52].mxu0  ;;  %v4603_v32 = vpop.f32.mrb[45].mxu1 }
 0x92b   : > { %v4621_v33 = vpop.f32.mrb[53].mxu0  ;;  %v1649_v34 = vpop.f32.mrb[46].mxu1  ;;  %v1903_v35 = vsel %vm577_vm3, %v1794_v29, -inf }
 0x92c   : > { %1904 = vmax.xlane.f32.xlu1 %v1903_v35  ;;  %v1797_v36 = vpop.f32.mrb[54].mxu0  ;;  %v4604_v37 = vpop.f32.mrb[47].mxu1 }
 0x92d   : > { %v4622_v39 = vpop.f32.mrb[55].mxu0 }
 0x931   : > { %v1744_v40 = vpop.f32.mrb[48].mxu1 }
 0x932   : > { %v1894_v41 = vpop.f32.mrb[56].mxu0  ;;  %v4615_v43 = vpop.f32.mrb[49].mxu1  ;;  %v1900_v44 = vsel %vm577_vm3, %v1744_v40, -inf }
 0x933   : > { %v4633_v45 = vpop.f32.mrb[57].mxu0  ;;  %1901 = vmax.xlane.f32.xlu0 %v1900_v44  ;;  %v1747_v46 = vpop.f32.mrb[50].mxu1  ;;  %v1909_v57 = vsel %vm577_vm3, %v1894_v41, -inf }
 0x934   : > { %v1897_v47 = vpop.f32.mrb[58].mxu0  ;;  %v4616_v48 = vpop.f32.mrb[51].mxu1 }
 0x935   : > { %v4634_v49 = vpop.f32.mrb[59].mxu0 }
 0x939   : > { %v1844_v50 = vpop.f32.mrb[52].mxu1 }
 0x93a   : > { %v4627_v51 = vpop.f32.mrb[53].mxu1  ;;  %v1906_v53 = vsel %vm577_vm3, %v1844_v50, -inf }
 0x93b   : > { %1907 = vmax.xlane.f32.xlu0 %v1906_v53  ;;  %v1847_v54 = vpop.f32.mrb[54].mxu1 }
 0x93c   : > { %v4628_v55 = vpop.f32.mrb[55].mxu1 }
 0x93d   : > { %1948 = vrot.lane.b32.xlu1 %v5182_v23, %s5088_s17 }
 0x93f   : > { %1910 = vmax.xlane.f32.xlu0 %v1909_v57 }
 0x9b9   : > { %v1905_v58 = vpop.xlane.xlu1 %1904 }
 0x9ba   : > { %v1913_v59 = vsub.f32 %v1794_v29, %v1905_v58 }
 0x9bc   : > { %v1918_v62 = vmul.f32 1.442695, %v1913_v59 }
 0x9bd   : > { %v1949_v63 = vpop.permute.xlu1 %1948 }
 0x9be   : > { %4971 = vpow2.f32 %v1918_v62  ;;  %v1954_v0 = vsel %vm632_vm4, %v1949_v63, 0 }
 0x9bf   : > { %4636 = vmatpush3.bf16.msra.mxu1 %v1954_v0 }
 0x9c0   : > { %v1902_v2 = vpop.xlane.xlu0 %1901  ;;  %4647 = vmatprep.subr.bf16.mxu1 %v5075_v1 }
 0x9c1   : > { %v1912_v3 = vsub.f32 %v1744_v40, %v1902_v2 }
 0x9c3   : > { %v1916_v4 = vmul.f32 1.442695, %v1912_v3 }
 0x9c5   : > { %4973 = vpow2.f32 %v1916_v4 }
 0x9c8   : > { %v4972_v5 = vpop.eup %4971  ;;  %v1908_v9 = vpop.xlane.xlu0 %1907 }
 0x9c9   : > { %v1927_v6 = vsel %vm577_vm3, %v4972_v5, 0.0  ;;  %v1914_v14 = vsub.f32 %v1844_v50, %v1908_v9 }
 0x9ca   : > { %1928 = vadd.xlane.f32.xlu0 %v1927_v6 }
 0x9cb   : > { %v1920_v15 = vmul.f32 1.442695, %v1914_v14 }
 0x9cc   : > { %v1911_v10 = vpop.xlane.xlu0 %1910 }
 0x9cd   : > { %v1915_v11 = vsub.f32 %v1894_v41, %v1911_v10 }
 0x9cf   : > { %v4974_v7 = vpop.eup %4973  ;;  %v1922_v13 = vmul.f32 1.442695, %v1915_v11 }
 0x9d0   : > { %v1924_v8 = vsel %vm577_vm3, %v4974_v7, 0.0 }
 0x9d1   : > { %1925 = vadd.xlane.f32.xlu1 %v1924_v8  ;;  %4975 = vpow2.f32 %v1922_v13 }
 0x9d2   : > { %4977 = vpow2.f32 %v1920_v15 }
 0x9db   : > { %v4976_v17 = vpop.eup %4975 }
 0x9dc   : > { %v1933_v18 = vsel %vm577_vm3, %v4976_v17, 0.0  ;;  %v4978_v19 = vpop.eup %4977 }
 0x9dd   : > { %v1930_v21 = vsel %vm577_vm3, %v4978_v19, 0.0 }
 0x9e0   : > { %1996 = vrot.lane.b32.xlu0 %v5188_v25, %s5088_s17 }
 0x9e2   : > { %2044 = vrot.lane.b32.xlu1 %v5184_v24, %s5088_s17 }
 0x9e6   : > { %2092 = vrot.lane.b32.xlu1 %v5190_v26, %s5088_s17 }
 0x9ff   : > { %1934 = vadd.xlane.f32.xlu0 %v1933_v18 }
 0xa0a   : > { %1931 = vadd.xlane.f32.xlu1 %v1930_v21 }
 0xa15   : > { %2142 = vrot.lane.b32.xlu0 %v5182_v23, %s5089_s22 }
 0xa19   : > { %2140 = vrot.lane.b32.xlu0 %v5182_v23, %s5090_s23 }
 0xa1b   : > { %2192 = vrot.lane.b32.xlu1 %v5188_v25, %s5089_s22 }
 0xa1d   : > { %2242 = vrot.lane.b32.xlu0 %v5184_v24, %s5089_s22 }
 0xa1f   : > { %2190 = vrot.lane.b32.xlu1 %v5188_v25, %s5090_s23 }
 0xa21   : > { %2240 = vrot.lane.b32.xlu0 %v5184_v24, %s5090_s23 }
 0xa23   : > { %2292 = vrot.lane.b32.xlu1 %v5190_v26, %s5089_s22 }
 0xa27   : > { %2290 = vrot.lane.b32.xlu1 %v5190_v26, %s5090_s23 }
 0xa57   : > { %v1929_v22 = vpop.xlane.xlu0 %1928 }
 0xa58   : > { %4979 = vrcp.f32 %v1929_v22 }
 0xa5b   : > { %v1997_v27 = vpop.permute.xlu0 %1996 }
 0xa5c   : > { %v2002_v29 = vsel %vm632_vm4, %v1997_v27, 0 }
 0xa5d   : > { %4642 = vmatpush3.bf16.msra.mxu0 %v2002_v29 }
 0xa5e   : > { %v1926_v32 = vpop.xlane.xlu1 %1925  ;;  %4653 = vmatprep.subr.bf16.mxu0 %v5075_v1 }
 0xa5f   : > { %4981 = vrcp.f32 %v1926_v32 }
 0xa62   : > { %v4980_v33 = vpop.eup %4979  ;;  %v2045_v34 = vpop.permute.xlu1 %2044 }
 0xa63   : > { %v1941_v35 = vmul.f32 %v4980_v33, %v4972_v5  ;;  %v2050_v44 = vsel %vm632_vm4, %v2045_v34, 0 }
 0xa65   : > { %v1945_v36 = vpack.c.bf16 %v1941_v35, %v1941_v35 }
 0xa66   : > { %v2093_v37 = vpop.permute.xlu1 %2092 }
 0xa67   : > { %v2098_v39 = vsel %vm632_vm4, %v2093_v37, 0  ;;  %4644 = vmatmul.mubr.msk.bf16.vlgmr.msra.gmra.mrb[60].mxu0 %vm628_vm5, %v1945_v36 }
 0xa68   : > { %4654 = vmatpush3.bf16.msra.mxu0 %v2098_v39  ;;  %4655 = vmatprep.mubr.msk.bf16.mxu0 %vm5076_vm0, %v5075_v1 }
 0xa69   : > { %v4982_v40 = vpop.eup %4981  ;;  %4665 = vmatprep.subr.bf16.mxu0 %v5075_v1 }
 0xa6a   : > { %v1940_v41 = vmul.f32 %v4982_v40, %v4974_v7 }
 0xa6c   : > { %v1944_v43 = vpack.c.bf16 %v1940_v41, %v1940_v41 }
 0xa6e   : > { %4638 = vmatmul.mubr.msk.bf16.vlgmr.msra.gmra.mrb[56].mxu1 %vm628_vm5, %v1944_v43 }
 0xa6f   : > { %4648 = vmatpush3.bf16.msra.mxu1 %v2050_v44  ;;  %4649 = vmatprep.mubr.msk.bf16.mxu1 %vm5076_vm0, %v5075_v1 }
 0xa70   : > { %4659 = vmatprep.subr.bf16.mxu1 %v5075_v1 }
 0xa8c   : > { %v1935_v45 = vpop.xlane.xlu0 %1934 }
 0xa8d   : > { %4983 = vrcp.f32 %v1935_v45 }
 0xa90   : > { %v2143_v54 = vpop.permute.xlu0 %2142 }
 0xa91   : > { %v2148_v0 = vsel %vm365_vm2, %v2143_v54, 0 }
 0xa94   : > { %v2141_v63 = vpop.permute.xlu0 %2140 }
 0xa97   : > { %v4984_v46 = vpop.eup %4983  ;;  %v1932_v47 = vpop.xlane.xlu1 %1931 }
 0xa98   : > { %4985 = vrcp.f32 %v1932_v47  ;;  %v1943_v48 = vmul.f32 %v4984_v46, %v4976_v17  ;;  %v2243_v3 = vpop.permute.xlu0 %2242 }
 0xa99   : > { %v2248_v4 = vsel %vm365_vm2, %v2243_v3, 0 }
 0xa9a   : > { %v1947_v49 = vpack.c.bf16 %v1943_v48, %v1943_v48 }
 0xa9b   : > { %v2193_v50 = vpop.permute.xlu1 %2192 }
 0xa9c   : > { %v2198_v51 = vsel %vm365_vm2, %v2193_v50, 0  ;;  %4656 = vmatmul.mubr.msk.bf16.vlgmr.msra.gmra.mrb[64].mxu0 %vm628_vm5, %v1947_v49  ;;  %v2241_v5 = vpop.permute.xlu0 %2240 }
 0xa9d   : > { %4666 = vmatpush3.bf16.xpose.msra.mxu0 %v2198_v51  ;;  %4667 = vmatprep.mubr.msk.bf16.mxu0 %vm5076_vm0, %v5075_v1 }
 0xa9e   : > { %4677 = vmatprep.subr.bf16.mxu0 %v5075_v1 }
 0xa9f   : > { %v2191_v53 = vpop.permute.xlu1 %2190 }
 0xaa2   : > { %v4986_v55 = vpop.eup %4985 }
 0xaa3   : > { %v2293_v57 = vpop.permute.xlu1 %2292  ;;  %v1942_v58 = vmul.f32 %v4986_v55, %v4978_v19 }
 0xaa4   : > { %v2298_v59 = vsel %vm365_vm2, %v2293_v57, 0  ;;  %4668 = vmatmul.mubr.msk.bf16.vlgmr.msra.gmra.mrb[68].mxu0 %vm365_vm2, %v2191_v53 }
 0xaa5   : > { %4678 = vmatpush3.bf16.xpose.msra.mxu0 %v2298_v59  ;;  %v1946_v62 = vpack.c.bf16 %v1942_v58, %v1942_v58  ;;  %4679 = vmatprep.mubr.msk.bf16.mxu0 %vm5076_vm0, %v5075_v1 }
 0xaa6   : > { %4689 = vmatprep.subr.bf16.mxu0 %v5075_v1 }
 0xaa7   : > { %4650 = vmatmul.mubr.msk.bf16.vlgmr.msra.gmra.mrb[60].mxu1 %vm628_vm5, %v1946_v62  ;;  %v2291_v2 = vpop.permute.xlu1 %2290 }
 0xaa8   : > { %4660 = vmatpush3.bf16.xpose.msra.mxu1 %v2148_v0  ;;  %4661 = vmatprep.mubr.msk.bf16.mxu1 %vm5076_vm0, %v5075_v1 }
 0xaa9   : > { %4671 = vmatprep.subr.bf16.mxu1 %v5075_v1 }
 0xaac   : > { %4680 = vmatmul.mubr.msk.bf16.vlgmr.msra.gmra.mrb[72].mxu0 %vm365_vm2, %v2291_v2 }
 0xaad   : > { %4691 = vmatprep.mubr.msk.bf16.mxu0 %vm5076_vm0, %v5075_v1 }
 0xaaf   : > { %4662 = vmatmul.mubr.msk.bf16.vlgmr.msra.gmra.mrb[64].mxu1 %vm365_vm2, %v2141_v63 }
 0xab0   : > { %4672 = vmatpush3.bf16.xpose.msra.mxu1 %v2248_v4  ;;  %4673 = vmatprep.mubr.msk.bf16.mxu1 %vm5076_vm0, %v5075_v1 }
 0xab1   : > { %4683 = vmatprep.subr.bf16.mxu1 %v5075_v1 }
 0xab7   : > { %4674 = vmatmul.mubr.msk.bf16.vlgmr.msra.gmra.mrb[68].mxu1 %vm365_vm2, %v2241_v5 }
 0xab8   : > { %4685 = vmatprep.mubr.msk.bf16.mxu1 %vm5076_vm0, %v5075_v1 }
 0xb3a   : > { %v5478_v6 = vpop.f32.mrb[60].mxu0 }
 0xb3b   : > { %v4645_v7 = vpop.f32.mrb[61].mxu0 }
 0xb3c   : > { %v2041_v8 = vpop.f32.mrb[62].mxu0 }
 0xb3d   : > { %v4646_v9 = vpop.f32.mrb[63].mxu0 }
 0xb41   : > { %v5480_v10 = vpop.f32.mrb[56].mxu1 }
 0xb42   : > { %v4639_v11 = vpop.f32.mrb[57].mxu1 }
 0xb43   : > { %v1993_v13 = vpop.f32.mrb[58].mxu1 }
 0xb44   : > { %v4640_v14 = vpop.f32.mrb[59].mxu1 }
 0xb6f   : > { %v5482_v15 = vpop.f32.mrb[64].mxu0 }
 0xb70   : > { %v4657_v17 = vpop.f32.mrb[65].mxu0 }
 0xb71   : > { %v2137_v18 = vpop.f32.mrb[66].mxu0 }
 0xb72   : > { %v4658_v19 = vpop.f32.mrb[67].mxu0 }
 0xb77   : > { %v2234_v21 = vpop.f32.mrb[68].mxu0 }
 0xb78   : > { %v4669_v22 = vpop.f32.mrb[69].mxu0  ;;  %v2343_v27 = vsel %vm577_vm3, %v2234_v21, -inf }
 0xb79   : > { %2344 = vmax.xlane.f32.xlu1 %v2343_v27  ;;  %v2237_v29 = vpop.f32.mrb[70].mxu0 }
 0xb7a   : > { %v5485_v32 = vpop.f32.mrb[60].mxu1  ;;  %v4670_v33 = vpop.f32.mrb[71].mxu0 }
 0xb7b   : > { %v4651_v34 = vpop.f32.mrb[61].mxu1 }
 0xb7c   : > { %v2089_v35 = vpop.f32.mrb[62].mxu1 }
 0xb7d   : > { %v4652_v36 = vpop.f32.mrb[63].mxu1 }
 0xb7f   : > { %v2334_v37 = vpop.f32.mrb[72].mxu0 }
 0xb80   : > { %v4681_v39 = vpop.f32.mrb[73].mxu0  ;;  %v2349_v54 = vsel %vm577_vm3, %v2334_v37, -inf }
 0xb81   : > { %v2337_v40 = vpop.f32.mrb[74].mxu0 }
 0xb82   : > { %v2184_v41 = vpop.f32.mrb[64].mxu1  ;;  %v4682_v43 = vpop.f32.mrb[75].mxu0 }
 0xb83   : > { %v4663_v44 = vpop.f32.mrb[65].mxu1  ;;  %v2340_v45 = vsel %vm577_vm3, %v2184_v41, -inf }
 0xb84   : > { %2341 = vmax.xlane.f32.xlu0 %v2340_v45  ;;  %v2187_v46 = vpop.f32.mrb[66].mxu1 }
 0xb85   : > { %v4664_v47 = vpop.f32.mrb[67].mxu1 }
 0xb8a   : > { %v2284_v48 = vpop.f32.mrb[68].mxu1  ;;  %2388 = vrot.lane.b32.xlu1 %v5182_v23, %s5091_s24 }
 0xb8b   : > { %v4675_v49 = vpop.f32.mrb[69].mxu1  ;;  %v2346_v50 = vsel %vm577_vm3, %v2284_v48, -inf }
 0xb8c   : > { %2347 = vmax.xlane.f32.xlu0 %v2346_v50  ;;  %v2287_v51 = vpop.f32.mrb[70].mxu1 }
 0xb8d   : > { %v4676_v53 = vpop.f32.mrb[71].mxu1 }
 0xb90   : > { %2350 = vmax.xlane.f32.xlu0 %v2349_v54 }
 0xc06   : > { %v2345_v55 = vpop.xlane.xlu1 %2344 }
 0xc07   : > { %v2353_v57 = vsub.f32 %v2234_v21, %v2345_v55 }
 0xc09   : > { %v2358_v58 = vmul.f32 1.442695, %v2353_v57 }
 0xc0a   : > { %v2389_v59 = vpop.permute.xlu1 %2388 }
 0xc0b   : > { %4987 = vpow2.f32 %v2358_v58  ;;  %v2394_v62 = vsel %vm632_vm4, %v2389_v59, 0 }
 0xc0c   : > { %4684 = vmatpush3.bf16.msra.mxu1 %v2394_v62 }
 0xc0d   : > { %4695 = vmatprep.subr.bf16.mxu1 %v5075_v1 }
 0xc11   : > { %v2342_v63 = vpop.xlane.xlu0 %2341 }
 0xc12   : > { %v2352_v0 = vsub.f32 %v2184_v41, %v2342_v63 }
 0xc14   : > { %v2356_v2 = vmul.f32 1.442695, %v2352_v0 }
 0xc15   : > { %v4988_v3 = vpop.eup %4987 }
 0xc16   : > { %4989 = vpow2.f32 %v2356_v2  ;;  %v2367_v4 = vsel %vm577_vm3, %v4988_v3, 0.0 }
 0xc17   : > { %2368 = vadd.xlane.f32.xlu0 %v2367_v4 }
 0xc19   : > { %v2348_v8 = vpop.xlane.xlu0 %2347 }
 0xc1a   : > { %v2354_v14 = vsub.f32 %v2284_v48, %v2348_v8 }
 0xc1c   : > { %v2360_v18 = vmul.f32 1.442695, %v2354_v14 }
 0xc1d   : > { %v2351_v9 = vpop.xlane.xlu0 %2350 }
 0xc1e   : > { %v2355_v11 = vsub.f32 %v2334_v37, %v2351_v9 }
 0xc20   : > { %v4990_v5 = vpop.eup %4989  ;;  %v2362_v13 = vmul.f32 1.442695, %v2355_v11 }
 0xc21   : > { %v2364_v7 = vsel %vm577_vm3, %v4990_v5, 0.0 }
 0xc22   : > { %2365 = vadd.xlane.f32.xlu1 %v2364_v7  ;;  %4991 = vpow2.f32 %v2362_v13 }
 0xc23   : > { %4993 = vpow2.f32 %v2360_v18 }
 0xc2c   : > { %v4992_v17 = vpop.eup %4991 }
 0xc2d   : > { %2436 = vrot.lane.b32.xlu0 %v5188_v25, %s5091_s24  ;;  %v2373_v19 = vsel %vm577_vm3, %v4992_v17, 0.0  ;;  %v4994_v21 = vpop.eup %4993 }
 0xc2e   : > { %v2370_v22 = vsel %vm577_vm3, %v4994_v21, 0.0 }
 0xc33   : > { %2484 = vrot.lane.b32.xlu1 %v5184_v24, %s5091_s24 }
 0xc37   : > { %2532 = vrot.lane.b32.xlu1 %v5190_v26, %s5091_s24 }
 0xc4c   : > { %2374 = vadd.xlane.f32.xlu0 %v2373_v19 }
 0xc5b   : > { %2371 = vadd.xlane.f32.xlu1 %v2370_v22 }
 0xc62   : > { %2582 = vrot.lane.b32.xlu0 %v5182_v23, %s5092_s25 }
 0xc66   : > { %2580 = vrot.lane.b32.xlu0 %v5182_v23, %s5093_s26 }
 0xc6a   : > { %2682 = vrot.lane.b32.xlu0 %v5184_v24, %s5092_s25 }
 0xc6c   : > { %2632 = vrot.lane.b32.xlu1 %v5188_v25, %s5092_s25 }
 0xc6e   : > { %2680 = vrot.lane.b32.xlu0 %v5184_v24, %s5093_s26 }
 0xc70   : > { %2630 = vrot.lane.b32.xlu1 %v5188_v25, %s5093_s26 }
 0xc74   : > { %2732 = vrot.lane.b32.xlu1 %v5190_v26, %s5092_s25 }
 0xc78   : > { %2730 = vrot.lane.b32.xlu1 %v5190_v26, %s5093_s26 }
 0xca4   : > { %v2369_v27 = vpop.xlane.xlu0 %2368 }
 0xca5   : > { %4995 = vrcp.f32 %v2369_v27 }
 0xca8   : > { %v2437_v29 = vpop.permute.xlu0 %2436 }
 0xca9   : > { %v2442_v33 = vsel %vm632_vm4, %v2437_v29, 0 }
 0xcaa   : > { %4690 = vmatpush3.bf16.msra.mxu0 %v2442_v33 }
 0xcab   : > { %4701 = vmatprep.subr.bf16.mxu0 %v5075_v1 }
 0xcaf   : > { %v4996_v34 = vpop.eup %4995  ;;  %v2366_v35 = vpop.xlane.xlu1 %2365 }
 0xcb0   : > { %v2381_v36 = vmul.f32 %v4996_v34, %v4988_v3  ;;  %4997 = vrcp.f32 %v2366_v35 }
 0xcb2   : > { %v2385_v37 = vpack.c.bf16 %v2381_v36, %v2381_v36 }
 0xcb3   : > { %v2485_v39 = vpop.permute.xlu1 %2484 }
 0xcb4   : > { %4692 = vmatmul.mubr.msk.bf16.vlgmr.msra.gmra.mrb[76].mxu0 %vm628_vm5, %v2385_v37  ;;  %v2490_v46 = vsel %vm632_vm4, %v2485_v39, 0 }
 0xcb5   : > { %4703 = vmatprep.mubr.msk.bf16.mxu0 %vm5076_vm0, %v5075_v1 }
 0xcb7   : > { %v2533_v40 = vpop.permute.xlu1 %2532 }
 0xcb8   : > { %v2538_v41 = vsel %vm632_vm4, %v2533_v40, 0 }
 0xcb9   : > { %4702 = vmatpush3.bf16.msra.mxu0 %v2538_v41 }
 0xcba   : > { %v4998_v43 = vpop.eup %4997  ;;  %4713 = vmatprep.subr.bf16.mxu0 %v5075_v1 }
 0xcbb   : > { %v2380_v44 = vmul.f32 %v4998_v43, %v4990_v5 }
 0xcbd   : > { %v2384_v45 = vpack.c.bf16 %v2380_v44, %v2380_v44 }
 0xcbf   : > { %4686 = vmatmul.mubr.msk.bf16.vlgmr.msra.gmra.mrb[72].mxu1 %vm628_vm5, %v2384_v45 }
 0xcc0   : > { %4696 = vmatpush3.bf16.msra.mxu1 %v2490_v46  ;;  %4697 = vmatprep.mubr.msk.bf16.mxu1 %vm5076_vm0, %v5075_v1 }
 0xcc1   : > { %4707 = vmatprep.subr.bf16.mxu1 %v5075_v1 }
 0xcd9   : > { %v2375_v47 = vpop.xlane.xlu0 %2374 }
 0xcda   : > { %4999 = vrcp.f32 %v2375_v47 }
 0xcdd   : > { %v2583_v57 = vpop.permute.xlu0 %2582 }
 0xcde   : > { %v2588_v3 = vsel %vm365_vm2, %v2583_v57, 0 }
 0xce1   : > { %v2581_v2 = vpop.permute.xlu0 %2580 }
 0xce4   : > { %v5000_v48 = vpop.eup %4999 }
 0xce5   : > { %v2383_v49 = vmul.f32 %v5000_v48, %v4992_v17  ;;  %v2683_v5 = vpop.permute.xlu0 %2682 }
 0xce6   : > { %v2688_v7 = vsel %vm365_vm2, %v2683_v5, 0 }
 0xce7   : > { %v2387_v50 = vpack.c.bf16 %v2383_v49, %v2383_v49 }
 0xce8   : > { %v2372_v51 = vpop.xlane.xlu1 %2371 }
 0xce9   : > { %5001 = vrcp.f32 %v2372_v51  ;;  %4704 = vmatmul.mubr.msk.bf16.vlgmr.msra.gmra.mrb[80].mxu0 %vm628_vm5, %v2387_v50  ;;  %v2681_v8 = vpop.permute.xlu0 %2680 }
 0xcea   : > { %4715 = vmatprep.mubr.msk.bf16.mxu0 %vm5076_vm0, %v5075_v1 }
 0xcec   : > { %v2633_v53 = vpop.permute.xlu1 %2632 }
 0xced   : > { %v2638_v54 = vsel %vm365_vm2, %v2633_v53, 0 }
 0xcee   : > { %4714 = vmatpush3.bf16.xpose.msra.mxu0 %v2638_v54 }
 0xcef   : > { %4725 = vmatprep.subr.bf16.mxu0 %v5075_v1 }
 0xcf0   : > { %v2631_v55 = vpop.permute.xlu1 %2630 }
 0xcf3   : > { %v5002_v58 = vpop.eup %5001 }
 0xcf4   : > { %v2382_v59 = vmul.f32 %v5002_v58, %v4994_v21  ;;  %v2733_v62 = vpop.permute.xlu1 %2732 }
 0xcf5   : > { %v2738_v63 = vsel %vm365_vm2, %v2733_v62, 0  ;;  %4716 = vmatmul.mubr.msk.bf16.vlgmr.msra.gmra.mrb[84].mxu0 %vm365_vm2, %v2631_v55 }
 0xcf6   : > { %4726 = vmatpush3.bf16.xpose.msra.mxu0 %v2738_v63  ;;  %v2386_v0 = vpack.c.bf16 %v2382_v59, %v2382_v59  ;;  %4727 = vmatprep.mubr.msk.bf16.mxu0 %vm5076_vm0, %v5075_v1 }
 0xcf7   : > { %4737 = vmatprep.subr.bf16.mxu0 %v5075_v1 }
 0xcf8   : > { %4698 = vmatmul.mubr.msk.bf16.vlgmr.msra.gmra.mrb[76].mxu1 %vm628_vm5, %v2386_v0  ;;  %v2731_v4 = vpop.permute.xlu1 %2730 }
 0xcf9   : > { %4708 = vmatpush3.bf16.xpose.msra.mxu1 %v2588_v3  ;;  %4709 = vmatprep.mubr.msk.bf16.mxu1 %vm5076_vm0, %v5075_v1 }
 0xcfa   : > { %4719 = vmatprep.subr.bf16.mxu1 %v5075_v1 }
 0xcfd   : > { %4728 = vmatmul.mubr.msk.bf16.vlgmr.msra.gmra.mrb[88].mxu0 %vm365_vm2, %v2731_v4 }
 0xcfe   : > { %4739 = vmatprep.mubr.msk.bf16.mxu0 %vm5076_vm0, %v5075_v1 }
 0xd00   : > { %4710 = vmatmul.mubr.msk.bf16.vlgmr.msra.gmra.mrb[80].mxu1 %vm365_vm2, %v2581_v2 }
 0xd01   : > { %4720 = vmatpush3.bf16.xpose.msra.mxu1 %v2688_v7  ;;  %4721 = vmatprep.mubr.msk.bf16.mxu1 %vm5076_vm0, %v5075_v1 }
 0xd02   : > { %4731 = vmatprep.subr.bf16.mxu1 %v5075_v1 }
 0xd08   : > { %4722 = vmatmul.mubr.msk.bf16.vlgmr.msra.gmra.mrb[84].mxu1 %vm365_vm2, %v2681_v8 }
 0xd09   : > { %4733 = vmatprep.mubr.msk.bf16.mxu1 %vm5076_vm0, %v5075_v1 }
 0xd87   : > { %v5550_v9 = vpop.f32.mrb[76].mxu0 }
 0xd88   : > { %v4693_v11 = vpop.f32.mrb[77].mxu0 }
 0xd89   : > { %v2481_v13 = vpop.f32.mrb[78].mxu0 }
 0xd8a   : > { %v4694_v14 = vpop.f32.mrb[79].mxu0 }
 0xd92   : > { %v5552_v17 = vpop.f32.mrb[72].mxu1 }
 0xd93   : > { %v4687_v18 = vpop.f32.mrb[73].mxu1 }
 0xd94   : > { %v2433_v19 = vpop.f32.mrb[74].mxu1 }
 0xd95   : > { %v4688_v21 = vpop.f32.mrb[75].mxu1 }
 0xdbc   : > { %v5554_v22 = vpop.f32.mrb[80].mxu0 }
 0xdbd   : > { %v4705_v27 = vpop.f32.mrb[81].mxu0 }
 0xdbe   : > { %v2577_v29 = vpop.f32.mrb[82].mxu0 }
 0xdbf   : > { %v4706_v33 = vpop.f32.mrb[83].mxu0 }
 0xdc8   : > { %v2674_v34 = vpop.f32.mrb[84].mxu0 }
 0xdc9   : > { %v4717_v35 = vpop.f32.mrb[85].mxu0  ;;  %v2783_v36 = vsel %vm577_vm3, %v2674_v34, -inf }
 0xdca   : > { %2784 = vmax.xlane.f32.xlu1 %v2783_v36  ;;  %v2677_v37 = vpop.f32.mrb[86].mxu0 }
 0xdcb   : > { %v5557_v39 = vpop.f32.mrb[76].mxu1  ;;  %v4718_v40 = vpop.f32.mrb[87].mxu0 }
 0xdcc   : > { %v4699_v41 = vpop.f32.mrb[77].mxu1 }
 0xdcd   : > { %v2529_v43 = vpop.f32.mrb[78].mxu1 }
 0xdce   : > { %v4700_v44 = vpop.f32.mrb[79].mxu1 }
 0xdd0   : > { %v2774_v45 = vpop.f32.mrb[88].mxu0 }
 0xdd1   : > { %v4729_v46 = vpop.f32.mrb[89].mxu0  ;;  %v2789_v63 = vsel %vm577_vm3, %v2774_v45, -inf }
 0xdd2   : > { %v2777_v47 = vpop.f32.mrb[90].mxu0 }
 0xdd3   : > { %v2624_v48 = vpop.f32.mrb[80].mxu1  ;;  %v4730_v49 = vpop.f32.mrb[91].mxu0 }
 0xdd4   : > { %v4711_v50 = vpop.f32.mrb[81].mxu1  ;;  %v2780_v51 = vsel %vm577_vm3, %v2624_v48, -inf }
 0xdd5   : > { %2781 = vmax.xlane.f32.xlu0 %v2780_v51  ;;  %v2627_v53 = vpop.f32.mrb[82].mxu1 }
 0xdd6   : > { %v4712_v54 = vpop.f32.mrb[83].mxu1 }
 0xddb   : > { %v2724_v55 = vpop.f32.mrb[84].mxu1  ;;  %2828 = vrot.lane.b32.xlu1 %v5182_v23, %s5094_s27 }
 0xddc   : > { %v4723_v57 = vpop.f32.mrb[85].mxu1  ;;  %v2786_v58 = vsel %vm577_vm3, %v2724_v55, -inf }
 0xddd   : > { %2787 = vmax.xlane.f32.xlu0 %v2786_v58  ;;  %v2727_v59 = vpop.f32.mrb[86].mxu1 }
 0xdde   : > { %v4724_v62 = vpop.f32.mrb[87].mxu1 }
 0xde1   : > { %2790 = vmax.xlane.f32.xlu0 %v2789_v63 }
 0xe57   : > { %v2785_v0 = vpop.xlane.xlu1 %2784 }
 0xe58   : > { %v2793_v2 = vsub.f32 %v2674_v34, %v2785_v0 }
 0xe5a   : > { %v2798_v3 = vmul.f32 1.442695, %v2793_v2 }
 0xe5b   : > { %v2829_v4 = vpop.permute.xlu1 %2828 }
 0xe5c   : > { %5003 = vpow2.f32 %v2798_v3  ;;  %v2834_v5 = vsel %vm632_vm4, %v2829_v4, 0 }
 0xe5d   : > { %4732 = vmatpush3.bf16.msra.mxu1 %v2834_v5 }
 0xe5e   : > { %4743 = vmatprep.subr.bf16.mxu1 %v5075_v1 }
 0xe62   : > { %v2782_v7 = vpop.xlane.xlu0 %2781 }
 0xe63   : > { %v2792_v8 = vsub.f32 %v2624_v48, %v2782_v7 }
 0xe65   : > { %v2796_v11 = vmul.f32 1.442695, %v2792_v8 }
 0xe66   : > { %v5004_v13 = vpop.eup %5003 }
 0xe67   : > { %5005 = vpow2.f32 %v2796_v11  ;;  %v2807_v14 = vsel %vm577_vm3, %v5004_v13, 0.0 }
 0xe68   : > { %2808 = vadd.xlane.f32.xlu0 %v2807_v14 }
 0xe6a   : > { %v2788_v21 = vpop.xlane.xlu0 %2787 }
 0xe6b   : > { %v2794_v34 = vsub.f32 %v2724_v55, %v2788_v21 }
 0xe6d   : > { %v2800_v36 = vmul.f32 1.442695, %v2794_v34 }
 0xe6e   : > { %v2791_v27 = vpop.xlane.xlu0 %2790 }
 0xe6f   : > { %v2795_v29 = vsub.f32 %v2774_v45, %v2791_v27 }
 0xe71   : > { %v5006_v18 = vpop.eup %5005  ;;  %v2802_v33 = vmul.f32 1.442695, %v2795_v29 }
 0xe72   : > { %v2804_v19 = vsel %vm577_vm3, %v5006_v18, 0.0 }
 0xe73   : > { %2805 = vadd.xlane.f32.xlu1 %v2804_v19  ;;  %5007 = vpow2.f32 %v2802_v33 }
 0xe74   : > { %5009 = vpow2.f32 %v2800_v36 }
 0xe7d   : > { %v5008_v35 = vpop.eup %5007 }
 0xe7e   : > { %2876 = vrot.lane.b32.xlu0 %v5188_v25, %s5094_s27  ;;  %v2813_v37 = vsel %vm577_vm3, %v5008_v35, 0.0  ;;  %v5010_v40 = vpop.eup %5009 }
 0xe7f   : > { %v2810_v41 = vsel %vm577_vm3, %v5010_v40, 0.0 }
 0xe84   : > { %2924 = vrot.lane.b32.xlu1 %v5184_v24, %s5094_s27 }
 0xe88   : > { %2972 = vrot.lane.b32.xlu1 %v5190_v26, %s5094_s27 }
 0xe9d   : > { %2814 = vadd.xlane.f32.xlu0 %v2813_v37 }
 0xeac   : > { %2811 = vadd.xlane.f32.xlu1 %v2810_v41 }
 0xeb3   : > { %3022 = vrot.lane.b32.xlu0 %v5182_v23, %s5095_s28 }
 0xeb7   : > { %3020 = vrot.lane.b32.xlu0 %v5182_v23, %s5096_s29 }
 0xebb   : > { %3122 = vrot.lane.b32.xlu0 %v5184_v24, %s5095_s28 }
 0xebd   : > { %3072 = vrot.lane.b32.xlu1 %v5188_v25, %s5095_s28 }
 0xebf   : > { %3120 = vrot.lane.b32.xlu0 %v5184_v24, %s5096_s29 }
 0xec1   : > { %3070 = vrot.lane.b32.xlu1 %v5188_v25, %s5096_s29 }
 0xec5   : > { %3172 = vrot.lane.b32.xlu1 %v5190_v26, %s5095_s28 }
 0xec9   : > { %3170 = vrot.lane.b32.xlu1 %v5190_v26, %s5096_s29 }
 0xef5   : > { %v2809_v43 = vpop.xlane.xlu0 %2808 }
 0xef6   : > { %5011 = vrcp.f32 %v2809_v43 }
 0xef9   : > { %v2877_v44 = vpop.permute.xlu0 %2876 }
 0xefa   : > { %v2882_v45 = vsel %vm632_vm4, %v2877_v44, 0 }
 0xefb   : > { %4738 = vmatpush3.bf16.msra.mxu0 %v2882_v45 }
 0xefc   : > { %4749 = vmatprep.subr.bf16.mxu0 %v5075_v1 }
 0xf00   : > { %v5012_v46 = vpop.eup %5011  ;;  %v2806_v47 = vpop.xlane.xlu1 %2805 }
 0xf01   : > { %v2821_v48 = vmul.f32 %v5012_v46, %v5004_v13  ;;  %5013 = vrcp.f32 %v2806_v47 }
 0xf03   : > { %v2825_v49 = vpack.c.bf16 %v2821_v48, %v2821_v48 }
 0xf04   : > { %v2925_v50 = vpop.permute.xlu1 %2924 }
 0xf05   : > { %4740 = vmatmul.mubr.msk.bf16.vlgmr.msra.gmra.mrb[92].mxu0 %vm628_vm5, %v2825_v49  ;;  %v2930_v58 = vsel %vm632_vm4, %v2925_v50, 0 }
 0xf06   : > { %4751 = vmatprep.mubr.msk.bf16.mxu0 %vm5076_vm0, %v5075_v1 }
 0xf08   : > { %v2973_v51 = vpop.permute.xlu1 %2972 }
 0xf09   : > { %v2978_v53 = vsel %vm632_vm4, %v2973_v51, 0 }
 0xf0a   : > { %4750 = vmatpush3.bf16.msra.mxu0 %v2978_v53 }
 0xf0b   : > { %v5014_v54 = vpop.eup %5013  ;;  %4761 = vmatprep.subr.bf16.mxu0 %v5075_v1 }
 0xf0c   : > { %v2820_v55 = vmul.f32 %v5014_v54, %v5006_v18 }
 0xf0e   : > { %v2824_v57 = vpack.c.bf16 %v2820_v55, %v2820_v55 }
 0xf10   : > { %4734 = vmatmul.mubr.msk.bf16.vlgmr.msra.gmra.mrb[88].mxu1 %vm628_vm5, %v2824_v57 }
 0xf11   : > { %4744 = vmatpush3.bf16.msra.mxu1 %v2930_v58  ;;  %4745 = vmatprep.mubr.msk.bf16.mxu1 %vm5076_vm0, %v5075_v1 }
 0xf12   : > { %4755 = vmatprep.subr.bf16.mxu1 %v5075_v1 }
 0xf2a   : > { %v2815_v59 = vpop.xlane.xlu0 %2814 }
 0xf2b   : > { %5015 = vrcp.f32 %v2815_v59 }
 0xf2e   : > { %v3023_v7 = vpop.permute.xlu0 %3022 }
 0xf2f   : > { %v3028_v21 = vsel %vm365_vm2, %v3023_v7, 0 }
 0xf32   : > { %v3021_v19 = vpop.permute.xlu0 %3020 }
 0xf35   : > { %v5016_v62 = vpop.eup %5015 }
 0xf36   : > { %v2823_v63 = vmul.f32 %v5016_v62, %v5008_v35  ;;  %v3123_v29 = vpop.permute.xlu0 %3122 }
 0xf37   : > { %v3128_v33 = vsel %vm365_vm2, %v3123_v29, 0 }
 0xf38   : > { %v2827_v0 = vpack.c.bf16 %v2823_v63, %v2823_v63 }
 0xf39   : > { %v2812_v2 = vpop.xlane.xlu1 %2811 }
 0xf3a   : > { %5017 = vrcp.f32 %v2812_v2  ;;  %4752 = vmatmul.mubr.msk.bf16.vlgmr.msra.gmra.mrb[96].mxu0 %vm628_vm5, %v2827_v0  ;;  %v3121_v34 = vpop.permute.xlu0 %3120 }
 0xf3b   : > { %4763 = vmatprep.mubr.msk.bf16.mxu0 %vm5076_vm0, %v5075_v1 }
 0xf3d   : > { %v3073_v3 = vpop.permute.xlu1 %3072 }
 0xf3e   : > { %v3078_v4 = vsel %vm365_vm2, %v3073_v3, 0 }
 0xf3f   : > { %4762 = vmatpush3.bf16.xpose.msra.mxu0 %v3078_v4 }
 0xf40   : > { %4773 = vmatprep.subr.bf16.mxu0 %v5075_v1 }
 0xf41   : > { %v3071_v5 = vpop.permute.xlu1 %3070 }
 0xf44   : > { %v5018_v8 = vpop.eup %5017 }
 0xf45   : > { %v2822_v11 = vmul.f32 %v5018_v8, %v5010_v40  ;;  %v3173_v13 = vpop.permute.xlu1 %3172 }
 0xf46   : > { %v3178_v14 = vsel %vm365_vm2, %v3173_v13, 0  ;;  %4764 = vmatmul.mubr.msk.bf16.vlgmr.msra.gmra.mrb[100].mxu0 %vm365_vm2, %v3071_v5 }
 0xf47   : > { %4774 = vmatpush3.bf16.xpose.msra.mxu0 %v3178_v14  ;;  %v2826_v18 = vpack.c.bf16 %v2822_v11, %v2822_v11  ;;  %4775 = vmatprep.mubr.msk.bf16.mxu0 %vm5076_vm0, %v5075_v1 }
 0xf48   : > { %4785 = vmatprep.subr.bf16.mxu0 %v5075_v1 }
 0xf49   : > { %4746 = vmatmul.mubr.msk.bf16.vlgmr.msra.gmra.mrb[92].mxu1 %vm628_vm5, %v2826_v18  ;;  %v3171_v27 = vpop.permute.xlu1 %3170 }
 0xf4a   : > { %4756 = vmatpush3.bf16.xpose.msra.mxu1 %v3028_v21  ;;  %4757 = vmatprep.mubr.msk.bf16.mxu1 %vm5076_vm0, %v5075_v1 }
 0xf4b   : > { %4767 = vmatprep.subr.bf16.mxu1 %v5075_v1 }
 0xf4e   : > { %4776 = vmatmul.mubr.msk.bf16.vlgmr.msra.gmra.mrb[104].mxu0 %vm365_vm2, %v3171_v27 }
 0xf4f   : > { %4787 = vmatprep.mubr.msk.bf16.mxu0 %vm5076_vm0, %v5075_v1 }
 0xf51   : > { %4758 = vmatmul.mubr.msk.bf16.vlgmr.msra.gmra.mrb[96].mxu1 %vm365_vm2, %v3021_v19 }
 0xf52   : > { %4768 = vmatpush3.bf16.xpose.msra.mxu1 %v3128_v33  ;;  %4769 = vmatprep.mubr.msk.bf16.mxu1 %vm5076_vm0, %v5075_v1 }
 0xf53   : > { %4779 = vmatprep.subr.bf16.mxu1 %v5075_v1 }
 0xf59   : > { %4770 = vmatmul.mubr.msk.bf16.vlgmr.msra.gmra.mrb[100].mxu1 %vm365_vm2, %v3121_v34 }
 0xf5a   : > { %4781 = vmatprep.mubr.msk.bf16.mxu1 %vm5076_vm0, %v5075_v1 }
 0xfd8   : > { %v5622_v35 = vpop.f32.mrb[92].mxu0 }
 0xfd9   : > { %v4741_v36 = vpop.f32.mrb[93].mxu0 }
 0xfda   : > { %v2921_v37 = vpop.f32.mrb[94].mxu0 }
 0xfdb   : > { %v4742_v40 = vpop.f32.mrb[95].mxu0 }
 0xfe3   : > { %v5624_v41 = vpop.f32.mrb[88].mxu1 }
 0xfe4   : > { %v4735_v43 = vpop.f32.mrb[89].mxu1 }
 0xfe5   : > { %v2873_v44 = vpop.f32.mrb[90].mxu1 }
 0xfe6   : > { %v4736_v45 = vpop.f32.mrb[91].mxu1 }
0x100d   : > { %v5626_v46 = vpop.f32.mrb[96].mxu0 }
0x100e   : > { %v4753_v47 = vpop.f32.mrb[97].mxu0 }
0x100f   : > { %v3017_v48 = vpop.f32.mrb[98].mxu0 }
0x1010   : > { %v4754_v49 = vpop.f32.mrb[99].mxu0 }
0x1019   : > { %v3114_v50 = vpop.f32.mrb[100].mxu0 }
0x101a   : > { %v4765_v51 = vpop.f32.mrb[101].mxu0  ;;  %v3223_v53 = vsel %vm577_vm3, %v3114_v50, -inf }
0x101b   : > { %3224 = vmax.xlane.f32.xlu1 %v3223_v53  ;;  %v3117_v54 = vpop.f32.mrb[102].mxu0 }
0x101c   : > { %v5629_v55 = vpop.f32.mrb[92].mxu1  ;;  %v4766_v57 = vpop.f32.mrb[103].mxu0 }
0x101d   : > { %v4747_v58 = vpop.f32.mrb[93].mxu1 }
0x101e   : > { %v2969_v59 = vpop.f32.mrb[94].mxu1 }
0x101f   : > { %v4748_v62 = vpop.f32.mrb[95].mxu1 }
0x1021   : > { %v3214_v63 = vpop.f32.mrb[104].mxu0 }
0x1022   : > { %v4777_v0 = vpop.f32.mrb[105].mxu0  ;;  %v3229_v27 = vsel %vm577_vm3, %v3214_v63, -inf }
0x1023   : > { %v3217_v2 = vpop.f32.mrb[106].mxu0 }
0x1024   : > { %v3064_v3 = vpop.f32.mrb[96].mxu1  ;;  %v4778_v4 = vpop.f32.mrb[107].mxu0 }
0x1025   : > { %v4759_v5 = vpop.f32.mrb[97].mxu1  ;;  %v3220_v7 = vsel %vm577_vm3, %v3064_v3, -inf }
0x1026   : > { %3221 = vmax.xlane.f32.xlu0 %v3220_v7  ;;  %v3067_v8 = vpop.f32.mrb[98].mxu1 }
0x1027   : > { %v4760_v11 = vpop.f32.mrb[99].mxu1 }
0x102c   : > { %v3164_v13 = vpop.f32.mrb[100].mxu1  ;;  %3268 = vrot.lane.b32.xlu1 %v5182_v23, %s5097_s30 }
0x102d   : > { %v4771_v14 = vpop.f32.mrb[101].mxu1  ;;  %v3226_v18 = vsel %vm577_vm3, %v3164_v13, -inf }
0x102e   : > { %3227 = vmax.xlane.f32.xlu0 %v3226_v18  ;;  %v3167_v19 = vpop.f32.mrb[102].mxu1 }
0x102f   : > { %v4772_v21 = vpop.f32.mrb[103].mxu1 }
0x1032   : > { %3230 = vmax.xlane.f32.xlu0 %v3229_v27 }
0x10a8   : > { %v3225_v29 = vpop.xlane.xlu1 %3224 }
0x10a9   : > { %v3233_v33 = vsub.f32 %v3114_v50, %v3225_v29 }
0x10ab   : > { %v3238_v34 = vmul.f32 1.442695, %v3233_v33 }
0x10ac   : > { %v3269_v36 = vpop.permute.xlu1 %3268 }
0x10ad   : > { %5019 = vpow2.f32 %v3238_v34  ;;  %v3274_v37 = vsel %vm632_vm4, %v3269_v36, 0 }
0x10ae   : > { %4780 = vmatpush3.bf16.msra.mxu1 %v3274_v37 }
0x10af   : > { %4791 = vmatprep.subr.bf16.mxu1 %v5075_v1 }
0x10b3   : > { %v3222_v40 = vpop.xlane.xlu0 %3221 }
0x10b4   : > { %v3232_v43 = vsub.f32 %v3064_v3, %v3222_v40 }
0x10b6   : > { %v3236_v44 = vmul.f32 1.442695, %v3232_v43 }
0x10b7   : > { %v5020_v45 = vpop.eup %5019 }
0x10b8   : > { %5021 = vpow2.f32 %v3236_v44  ;;  %v3247_v47 = vsel %vm577_vm3, %v5020_v45, 0.0 }
0x10b9   : > { %3248 = vadd.xlane.f32.xlu0 %v3247_v47 }
0x10bb   : > { %v3228_v50 = vpop.xlane.xlu0 %3227 }
0x10bc   : > { %v3234_v57 = vsub.f32 %v3164_v13, %v3228_v50 }
0x10be   : > { %v3240_v59 = vmul.f32 1.442695, %v3234_v57 }
0x10bf   : > { %v3231_v51 = vpop.xlane.xlu0 %3230 }
0x10c0   : > { %v3235_v53 = vsub.f32 %v3214_v63, %v3231_v51 }
0x10c2   : > { %v5022_v48 = vpop.eup %5021  ;;  %v3242_v54 = vmul.f32 1.442695, %v3235_v53 }
0x10c3   : > { %v3244_v49 = vsel %vm577_vm3, %v5022_v48, 0.0 }
0x10c4   : > { %3245 = vadd.xlane.f32.xlu1 %v3244_v49  ;;  %5023 = vpow2.f32 %v3242_v54 }
0x10c5   : > { %5025 = vpow2.f32 %v3240_v59 }
0x10ce   : > { %v5024_v58 = vpop.eup %5023 }
0x10cf   : > { %3316 = vrot.lane.b32.xlu0 %v5188_v25, %s5097_s30  ;;  %v3253_v62 = vsel %vm577_vm3, %v5024_v58, 0.0  ;;  %v5026_v0 = vpop.eup %5025 }
0x10d0   : > { %v3250_v2 = vsel %vm577_vm3, %v5026_v0, 0.0 }
0x10d5   : > { %3364 = vrot.lane.b32.xlu1 %v5184_v24, %s5097_s30 }
0x10d9   : > { %3412 = vrot.lane.b32.xlu1 %v5190_v26, %s5097_s30 }
0x10ee   : > { %3254 = vadd.xlane.f32.xlu0 %v3253_v62 }
0x10fd   : > { %3251 = vadd.xlane.f32.xlu1 %v3250_v2 }
0x1104   : > { %3462 = vrot.lane.b32.xlu0 %v5182_v23, %s5098_s6 }
0x1108   : > { %3460 = vrot.lane.b32.xlu0 %v5182_v23, %s5099_s7 }
0x110c   : > { %3562 = vrot.lane.b32.xlu0 %v5184_v24, %s5098_s6 }
0x110e   : > { %3512 = vrot.lane.b32.xlu1 %v5188_v25, %s5098_s6 }
0x1110   : > { %3560 = vrot.lane.b32.xlu0 %v5184_v24, %s5099_s7 }
0x1112   : > { %3510 = vrot.lane.b32.xlu1 %v5188_v25, %s5099_s7 }
0x1116   : > { %3612 = vrot.lane.b32.xlu1 %v5190_v26, %s5098_s6 }
0x111a   : > { %3610 = vrot.lane.b32.xlu1 %v5190_v26, %s5099_s7  ;;  %s4324_s7 = sshll.u32 %s5850_s18, 5 }
0x1146   : > { %v3249_v63 = vpop.xlane.xlu0 %3248 }
0x1147   : > { %5027 = vrcp.f32 %v3249_v63 }
0x114a   : > { %v3317_v3 = vpop.permute.xlu0 %3316 }
0x114b   : > { %v3322_v4 = vsel %vm632_vm4, %v3317_v3, 0 }
0x114c   : > { %4786 = vmatpush3.bf16.msra.mxu0 %v3322_v4 }
0x114d   : > { %4797 = vmatprep.subr.bf16.mxu0 %v5075_v1 }
0x1151   : > { %v5028_v5 = vpop.eup %5027  ;;  %v3246_v7 = vpop.xlane.xlu1 %3245 }
0x1152   : > { %v3261_v8 = vmul.f32 %v5028_v5, %v5020_v45  ;;  %5029 = vrcp.f32 %v3246_v7 }
0x1154   : > { %v3265_v11 = vpack.c.bf16 %v3261_v8, %v3261_v8 }
0x1155   : > { %v3365_v13 = vpop.permute.xlu1 %3364 }
0x1156   : > { %4788 = vmatmul.mubr.msk.bf16.vlgmr.msra.gmra.mrb[108].mxu0 %vm628_vm5, %v3265_v11  ;;  %v3370_v29 = vsel %vm632_vm4, %v3365_v13, 0 }
0x1157   : > { %4799 = vmatprep.mubr.msk.bf16.mxu0 %vm5076_vm0, %v5075_v1 }
0x1159   : > { %v3413_v14 = vpop.permute.xlu1 %3412 }
0x115a   : > { %v3418_v18 = vsel %vm632_vm4, %v3413_v14, 0 }
0x115b   : > { %4798 = vmatpush3.bf16.msra.mxu0 %v3418_v18 }
0x115c   : > { %v5030_v19 = vpop.eup %5029  ;;  %4809 = vmatprep.subr.bf16.mxu0 %v5075_v1 }
0x115d   : > { %v3260_v21 = vmul.f32 %v5030_v19, %v5022_v48 }
0x115f   : > { %v3264_v27 = vpack.c.bf16 %v3260_v21, %v3260_v21 }
0x1161   : > { %4782 = vmatmul.mubr.msk.bf16.vlgmr.msra.gmra.mrb[104].mxu1 %vm628_vm5, %v3264_v27 }
0x1162   : > { %4792 = vmatpush3.bf16.msra.mxu1 %v3370_v29  ;;  %4793 = vmatprep.mubr.msk.bf16.mxu1 %vm5076_vm0, %v5075_v1 }
0x1163   : > { %4803 = vmatprep.subr.bf16.mxu1 %v5075_v1 }
0x117b   : > { %v3255_v33 = vpop.xlane.xlu0 %3254 }
0x117c   : > { %5031 = vrcp.f32 %v3255_v33 }
0x117f   : > { %v3463_v47 = vpop.permute.xlu0 %3462 }
0x1180   : > { %v3468_v57 = vsel %vm365_vm2, %v3463_v47, 0 }
0x1183   : > { %v3461_v54 = vpop.permute.xlu0 %3460 }
0x1186   : > { %v5032_v34 = vpop.eup %5031 }
0x1187   : > { %v3263_v36 = vmul.f32 %v5032_v34, %v5024_v58  ;;  %v3563_v59 = vpop.permute.xlu0 %3562 }
0x1188   : > { %v3568_v62 = vsel %vm365_vm2, %v3563_v59, 0 }
0x1189   : > { %v3267_v37 = vpack.c.bf16 %v3263_v36, %v3263_v36 }
0x118a   : > { %v3252_v40 = vpop.xlane.xlu1 %3251 }
0x118b   : > { %5033 = vrcp.f32 %v3252_v40  ;;  %4800 = vmatmul.mubr.msk.bf16.vlgmr.msra.gmra.mrb[112].mxu0 %vm628_vm5, %v3267_v37 }
0x118c   : > { %4811 = vmatprep.mubr.msk.bf16.mxu0 %vm5076_vm0, %v5075_v1 }
0x118e   : > { %v3513_v43 = vpop.permute.xlu1 %3512 }
0x118f   : > { %v3518_v44 = vsel %vm365_vm2, %v3513_v43, 0 }
0x1190   : > { %4810 = vmatpush3.bf16.xpose.msra.mxu0 %v3518_v44 }
0x1191   : > { %4821 = vmatprep.subr.bf16.mxu0 %v5075_v1 }
0x1192   : > { %v3511_v45 = vpop.permute.xlu1 %3510 }
0x1195   : > { %v5034_v48 = vpop.eup %5033 }
0x1196   : > { %v3262_v49 = vmul.f32 %v5034_v48, %v5026_v0  ;;  %v3613_v50 = vpop.permute.xlu1 %3612  ;;  %v3561_v0 = vpop.permute.xlu0 %3560 }
0x1197   : > { %v3618_v51 = vsel %vm365_vm2, %v3613_v50, 0  ;;  %4812 = vmatmul.mubr.msk.bf16.vlgmr.msra.gmra.mrb[116].mxu0 %vm365_vm2, %v3511_v45 }
0x1198   : > { %4822 = vmatpush3.bf16.xpose.msra.mxu0 %v3618_v51  ;;  %v3266_v53 = vpack.c.bf16 %v3262_v49, %v3262_v49  ;;  %4823 = vmatprep.mubr.msk.bf16.mxu0 %vm5076_vm0, %v5075_v1 }
0x1199   : > { %4833 = vmatprep.subr.bf16.mxu0 %v5075_v1 }
0x119a   : > { %4794 = vmatmul.mubr.msk.bf16.vlgmr.msra.gmra.mrb[108].mxu1 %vm628_vm5, %v3266_v53  ;;  %v3611_v58 = vpop.permute.xlu1 %3610 }
0x119b   : > { %4804 = vmatpush3.bf16.xpose.msra.mxu1 %v3468_v57  ;;  %4805 = vmatprep.mubr.msk.bf16.mxu1 %vm5076_vm0, %v5075_v1 }
0x119c   : > { %4815 = vmatprep.subr.bf16.mxu1 %v5075_v1 }
0x119f   : > { %4824 = vmatmul.mubr.msk.bf16.vlgmr.msra.gmra.mrb[120].mxu0 %vm365_vm2, %v3611_v58 }
0x11a0   : > { %4835 = vmatprep.mubr.msk.bf16.mxu0 %vm5076_vm0, %v5075_v1 }
0x11a2   : > { %4806 = vmatmul.mubr.msk.bf16.vlgmr.msra.gmra.mrb[112].mxu1 %vm365_vm2, %v3461_v54 }
0x11a3   : > { %4816 = vmatpush3.bf16.xpose.msra.mxu1 %v3568_v62  ;;  %4817 = vmatprep.mubr.msk.bf16.mxu1 %vm5076_vm0, %v5075_v1 }
0x11a4   : > { %4827 = vmatprep.subr.bf16.mxu1 %v5075_v1 }
0x11aa   : > { %4818 = vmatmul.mubr.msk.bf16.vlgmr.msra.gmra.mrb[116].mxu1 %vm365_vm2, %v3561_v0 }
0x11ab   : > { %4829 = vmatprep.mubr.msk.bf16.mxu1 %vm5076_vm0, %v5075_v1 }
0x1229   : > { %v5694_v2 = vpop.f32.mrb[108].mxu0 }
0x122a   : > { %v4789_v63 = vpop.f32.mrb[109].mxu0 }
0x122b   : > { %v3361_v3 = vpop.f32.mrb[110].mxu0 }
0x122c   : > { %v4790_v4 = vpop.f32.mrb[111].mxu0 }
0x1234   : > { %v5696_v5 = vpop.f32.mrb[104].mxu1 }
0x1235   : > { %v4783_v7 = vpop.f32.mrb[105].mxu1 }
0x1236   : > { %v3313_v8 = vpop.f32.mrb[106].mxu1 }
0x1237   : > { %v4784_v11 = vpop.f32.mrb[107].mxu1 }
0x125e   : > { %v5698_v13 = vpop.f32.mrb[112].mxu0 }
0x125f   : > { %v4801_v14 = vpop.f32.mrb[113].mxu0 }
0x1260   : > { %v3457_v18 = vpop.f32.mrb[114].mxu0 }
0x1261   : > { %v4802_v19 = vpop.f32.mrb[115].mxu0 }
0x126a   : > { %v3554_v21 = vpop.f32.mrb[116].mxu0 }
0x126b   : > { %v4813_v27 = vpop.f32.mrb[117].mxu0  ;;  %v3663_v29 = vsel %vm577_vm3, %v3554_v21, -inf }
0x126c   : > { %3664 = vmax.xlane.f32.xlu1 %v3663_v29  ;;  %v3557_v33 = vpop.f32.mrb[118].mxu0 }
0x126d   : > { %v5701_v34 = vpop.f32.mrb[108].mxu1  ;;  %v4814_v36 = vpop.f32.mrb[119].mxu0 }
0x126e   : > { %v4795_v37 = vpop.f32.mrb[109].mxu1 }
0x126f   : > { %v3409_v40 = vpop.f32.mrb[110].mxu1 }
0x1270   : > { %v4796_v43 = vpop.f32.mrb[111].mxu1 }
0x1272   : > { %v3654_v44 = vpop.f32.mrb[120].mxu0 }
0x1273   : > { %v4825_v45 = vpop.f32.mrb[121].mxu0  ;;  %v3669_v63 = vsel %vm577_vm3, %v3654_v44, -inf }
0x1274   : > { %v3657_v47 = vpop.f32.mrb[122].mxu0 }
0x1275   : > { %v3504_v48 = vpop.f32.mrb[112].mxu1  ;;  %v4826_v49 = vpop.f32.mrb[123].mxu0 }
0x1276   : > { %v4807_v50 = vpop.f32.mrb[113].mxu1  ;;  %v3660_v51 = vsel %vm577_vm3, %v3504_v48, -inf }
0x1277   : > { %3661 = vmax.xlane.f32.xlu0 %v3660_v51  ;;  %v3507_v53 = vpop.f32.mrb[114].mxu1 }
0x1278   : > { %v4808_v54 = vpop.f32.mrb[115].mxu1 }
0x127d   : > { %v3604_v57 = vpop.f32.mrb[116].mxu1  ;;  %3708 = vrot.lane.b32.xlu1 %v5182_v23, %s5100_s8 }
0x127e   : > { %v4819_v58 = vpop.f32.mrb[117].mxu1  ;;  %v3666_v59 = vsel %vm577_vm3, %v3604_v57, -inf }
0x127f   : > { %3667 = vmax.xlane.f32.xlu0 %v3666_v59  ;;  %v3607_v62 = vpop.f32.mrb[118].mxu1 }
0x1280   : > { %v4820_v0 = vpop.f32.mrb[119].mxu1 }
0x1283   : > { %3670 = vmax.xlane.f32.xlu0 %v3669_v63  ;;  %v4058_v63 = vld [vmem:[%s5843_s4] sm:$0xff] }
0x12f9   : > { %v3665_v3 = vpop.xlane.xlu1 %3664 }
0x12fa   : > { %v3673_v4 = vsub.f32 %v3554_v21, %v3665_v3 }
0x12fc   : > { %v3678_v7 = vmul.f32 1.442695, %v3673_v4  ;;  %v5108_v4 = vmov 0  }
0x12fd   : > { %v3709_v8 = vpop.permute.xlu1 %3708  ;;  %4917 = vset.pattern.permute.xlu1 %v5108_v4  ;;  %4916 = vset.pattern.permute.xlu0 %v5108_v4 }
0x12fe   : > { %5035 = vpow2.f32 %v3678_v7  ;;  %v3714_v11 = vsel %vm632_vm4, %v3709_v8, 0  ;;  %v4059_v7 = vld [vmem:[%s5843_s4 + $0x8] sm:$0xff] }
0x12ff   : > { %4828 = vmatpush3.bf16.msra.mxu1 %v3714_v11  ;;  %v4061_v11 = vld [vmem:[%s5843_s4 + $0x18] sm:$0xff] }
0x1300   : > { %4839 = vmatprep.subr.bf16.mxu1 %v5075_v1 }
0x1304   : > { %v3662_v23 = vpop.xlane.xlu0 %3661 }
0x1305   : > { %v3672_v14 = vsub.f32 %v3504_v48, %v3662_v23  ;;  %v4060_v23 = vld [vmem:[%s5843_s4 + $0x10] sm:$0xff] }
0x1307   : > { %v3676_v18 = vmul.f32 1.442695, %v3672_v14 }
0x1308   : > { %v5710_v19 = vpop.eup %5035 }
0x1309   : > { %5037 = vpow2.f32 %v3676_v18  ;;  %v3687_v27 = vsel %vm577_vm3, %v5710_v19, 0.0 }
0x130a   : > { %3688 = vadd.xlane.f32.xlu0 %v3687_v27 }
0x130c   : > { %v3668_v29 = vpop.xlane.xlu0 %3667 }
0x130d   : > { %v3674_v21 = vsub.f32 %v3604_v57, %v3668_v29 }
0x130f   : > { %v3680_v33 = vmul.f32 1.442695, %v3674_v21 }
0x1310   : > { %v3671_v36 = vpop.xlane.xlu0 %3670 }
0x1311   : > { %5039 = vpow2.f32 %v3680_v33  ;;  %v3675_v37 = vsub.f32 %v3654_v44, %v3671_v36 }
0x1313   : > { %v5038_v40 = vpop.eup %5037  ;;  %v3682_v43 = vmul.f32 1.442695, %v3675_v37 }
0x1314   : > { %v3684_v45 = vsel %vm577_vm3, %v5038_v40, 0.0 }
0x1315   : > { %5041 = vpow2.f32 %v3682_v43  ;;  %3685 = vadd.xlane.f32.xlu1 %v3684_v45 }
0x131b   : > { %v5715_v47 = vpop.eup %5039 }
0x131c   : > { %v3690_v48 = vsel %vm577_vm3, %v5715_v47, 0.0 }
0x131d   : > { %3691 = vadd.xlane.f32.xlu1 %v3690_v48 }
0x131f   : > { %v5719_v49 = vpop.eup %5041 }
0x1320   : > { %v3693_v50 = vsel %vm577_vm3, %v5719_v49, 0.0 }
0x1321   : > { %3694 = vadd.xlane.f32.xlu0 %v3693_v50 }
0x132e   : > { %3804 = vrot.lane.b32.xlu1 %v5184_v24, %s5100_s8 }
0x1332   : > { %3852 = vrot.lane.b32.xlu1 %v5190_v26, %s5100_s8 }
0x1336   : > { %3906 = vrot.lane.b32.xlu1 %v5344_v31, %s5101_s9 }
0x1337   : > { %3756 = vrot.lane.b32.xlu0 %v5188_v25, %s5100_s8 }
0x133a   : > { %3910 = vrot.lane.b32.xlu1 %v5346_v38, %s5101_s9 }
0x133b   : > { %3904 = vrot.lane.b32.xlu0 %v5342_v30, %s5101_s9 }
0x133e   : > { %3922 = vrot.lane.b32.xlu1 %v5410_v12, %s5102_s10 }
0x133f   : > { %3908 = vrot.lane.b32.xlu0 %v5348_v42, %s5101_s9 }
0x1342   : > { %3926 = vrot.lane.b32.xlu1 %v5414_v20, %s5102_s10 }
0x1343   : > { %3920 = vrot.lane.b32.xlu0 %v5412_v16, %s5102_s10 }
0x1346   : > { %3938 = vrot.lane.b32.xlu1 %v5478_v6, %s5103_s11 }
0x1347   : > { %3924 = vrot.lane.b32.xlu0 %v5416_v28, %s5102_s10  ;;  %s260_s10 = scalar_lea.vmem %s5844_s5, %s4324_s7 }
0x134a   : > { %3942 = vrot.lane.b32.xlu1 %v5482_v15, %s5103_s11 }
0x134b   : > { %3936 = vrot.lane.b32.xlu0 %v5480_v10, %s5103_s11 }
0x134e   : > { %3954 = vrot.lane.b32.xlu1 %v5550_v9, %s5104_s12 }
0x134f   : > { %3940 = vrot.lane.b32.xlu0 %v5485_v32, %s5103_s11 }
0x1352   : > { %3958 = vrot.lane.b32.xlu1 %v5554_v22, %s5104_s12 }
0x1353   : > { %3952 = vrot.lane.b32.xlu0 %v5552_v17, %s5104_s12 }
0x1356   : > { %3970 = vrot.lane.b32.xlu1 %v5622_v35, %s5105_s13 }
0x1357   : > { %3956 = vrot.lane.b32.xlu0 %v5557_v39, %s5104_s12 }
0x135a   : > { %3974 = vrot.lane.b32.xlu1 %v5626_v46, %s5105_s13 }
0x135b   : > { %3968 = vrot.lane.b32.xlu0 %v5624_v41, %s5105_s13 }
0x135e   : > { %3986 = vrot.lane.b32.xlu1 %v5694_v2, %s5106_s14 }
0x135f   : > { %3972 = vrot.lane.b32.xlu0 %v5629_v55, %s5105_s13 }
0x1362   : > { %3990 = vrot.lane.b32.xlu1 %v5698_v13, %s5106_s14 }
0x1363   : > { %3984 = vrot.lane.b32.xlu0 %v5696_v5, %s5106_s14 }
0x1367   : > { %3988 = vrot.lane.b32.xlu0 %v5701_v34, %s5106_s14 }
0x1397   : > { %v3689_v24 = vpop.xlane.xlu0 %3688 }
0x13a2   : > { %v3686_v25 = vpop.xlane.xlu1 %3685 }
0x13a3   : > { %5043 = vrcp.f32 %v3686_v25 }
0x13a4   : > { %5045 = vrcp.f32 %v3689_v24 }
0x13aa   : > { %v3692_v26 = vpop.xlane.xlu1 %3691 }
0x13ab   : > { %5047 = vrcp.f32 %v3692_v26 }
0x13ad   : > { %v5044_v30 = vpop.eup %5043 }
0x13ae   : > { %v5046_v31 = vpop.eup %5045  ;;  %v3700_v38 = vmul.f32 %v5044_v30, %v5038_v40  ;;  %v3805_v42 = vpop.permute.xlu1 %3804 }
0x13af   : > { %v3695_v12 = vpop.xlane.xlu0 %3694  ;;  %v3701_v20 = vmul.f32 %v5046_v31, %v5710_v19  ;;  %v3810_v28 = vsel %vm632_vm4, %v3805_v42, 0 }
0x13b0   : > { %5049 = vrcp.f32 %v3695_v12  ;;  %v3704_v16 = vpack.c.bf16 %v3700_v38, %v3700_v38 }
0x13b1   : > { %v3705_v9 = vpack.c.bf16 %v3701_v20, %v3701_v20 }
0x13b2   : > { %4830 = vmatmul.mubr.msk.bf16.vlgmr.msra.gmra.mrb[120].mxu1 %vm628_vm5, %v3704_v16  ;;  %v3853_v15 = vpop.permute.xlu1 %3852 }
0x13b3   : > { %v3757_v6 = vpop.permute.xlu0 %3756  ;;  %4840 = vmatpush3.bf16.msra.mxu1 %v3810_v28  ;;  %4841 = vmatprep.mubr.msk.bf16.mxu1 %vm5076_vm0, %v5075_v1  ;;  %v3858_v22 = vsel %vm632_vm4, %v3853_v15, 0 }
0x13b4   : > { %v3762_v10 = vsel %vm632_vm4, %v3757_v6, 0 }
0x13b5   : > { %4834 = vmatpush3.bf16.msra.mxu0 %v3762_v10  ;;  %v5048_v32 = vpop.eup %5047 }
0x13b6   : > { %4845 = vmatprep.subr.bf16.mxu0 %v5075_v1  ;;  %v3702_v17 = vmul.f32 %v5048_v32, %v5715_v47  ;;  %v3907_v18 = vpop.permute.xlu1 %3906 }
0x13b7   : > { %v3905_v14 = vpop.permute.xlu0 %3904  ;;  %v4013_v12 = vsel %vm365_vm2, %v5276_v56, %v3907_v18 }
0x13b8   : > { %4836 = vmatmul.mubr.msk.bf16.vlgmr.msra.gmra.mrb[124].mxu0 %vm628_vm5, %v3705_v9  ;;  %v3706_v39 = vpack.c.bf16 %v3702_v17, %v3702_v17  ;;  %v4012_v16 = vsel %vm365_vm2, %v5274_v52, %v3905_v14 }
0x13b9   : > { %4846 = vmatpush3.bf16.msra.mxu0 %v3858_v22  ;;  %4847 = vmatprep.mubr.msk.bf16.mxu0 %vm5076_vm0, %v5075_v1  ;;  %v4921_v1 = vld [vmem:[%s5842_s3] sm:$0xff]  }
0x13ba   : > { %v5050_v35 = vpop.eup %5049  ;;  %4842 = vmatmul.mubr.msk.bf16.vlgmr.msra.gmra.mrb[124].mxu1 %vm628_vm5, %v3706_v39  ;;  %v3911_v27 = vpop.permute.xlu1 %3910 }
0x13bb   : > { %v3703_v41 = vmul.f32 %v5050_v35, %v5719_v49  ;;  %4853 = vmatprep.mubr.msk.bf16.mxu1 %vm4092_vm6, %v4921_v1  ;;  %v3909_v19 = vpop.permute.xlu0 %3908 }
0x13bd   : > { %v3707_v46 = vpack.c.bf16 %v3703_v41, %v3703_v41 }
0x13be   : > { %v3923_v21 = vpop.permute.xlu1 %3922 }
0x13bf   : > { %v3921_v29 = vpop.permute.xlu0 %3920  ;;  %v4017_v20 = vsel %vm628_vm5, %v4013_v12, %v3923_v21 }
0x13c0   : > { %4848 = vmatmul.mubr.msk.bf16.vlgmr.msra.gmra.mrb[128].mxu0 %vm628_vm5, %v3707_v46  ;;  %v4016_v28 = vsel %vm628_vm5, %v4012_v16, %v3921_v29 }
0x13c2   : > { %v3927_v36 = vpop.permute.xlu1 %3926 }
0x13c3   : > { %v3925_v33 = vpop.permute.xlu0 %3924 }
0x13c6   : > { %v3939_v40 = vpop.permute.xlu1 %3938 }
0x13c7   : > { %v3937_v37 = vpop.permute.xlu0 %3936  ;;  %v4022_v10 = vsel %vm4020_vm7, %v4017_v20, %v3939_v40 }
0x13c8   : > { %v4021_v15 = vsel %vm4020_vm7, %v4016_v28, %v3937_v37 }
0x13ca   : > { %v3943_v45 = vpop.permute.xlu1 %3942 }
0x13cb   : > { %v3941_v43 = vpop.permute.xlu0 %3940 }
0x13ce   : > { %v3955_v48 = vpop.permute.xlu1 %3954 }
0x13cf   : > { %v3953_v47 = vpop.permute.xlu0 %3952  ;;  %v4027_v32 = vsel %vm4025_vm8, %v4022_v10, %v3955_v48 }
0x13d0   : > { %v4026_v9 = vsel %vm4025_vm8, %v4021_v15, %v3953_v47 }
0x13d2   : > { %v3959_v50 = vpop.permute.xlu1 %3958 }
0x13d3   : > { %v3957_v49 = vpop.permute.xlu0 %3956 }
0x13d6   : > { %v3971_v25 = vpop.permute.xlu1 %3970 }
0x13d7   : > { %v3969_v24 = vpop.permute.xlu0 %3968  ;;  %v4032_v52 = vsel %vm4030_vm9, %v4027_v32, %v3971_v25 }
0x13d8   : > { %v4031_v17 = vsel %vm4030_vm9, %v4026_v9, %v3969_v24 }
0x13da   : > { %v3975_v30 = vpop.permute.xlu1 %3974 }
0x13db   : > { %v3973_v26 = vpop.permute.xlu0 %3972 }
0x13de   : > { %v3987_v38 = vpop.permute.xlu1 %3986 }
0x13df   : > { %v3985_v31 = vpop.permute.xlu0 %3984  ;;  %v4037_v22 = vsel %vm4035_vm10, %v4032_v52, %v3987_v38 }
0x13e0   : > { %v4036_v39 = vsel %vm4035_vm10, %v4031_v17, %v3985_v31 }
0x13e2   : > { %v3991_v6 = vpop.permute.xlu1 %3990 }
0x13e3   : > { %v3989_v42 = vpop.permute.xlu0 %3988 }
0x1485   : > { %v3750_v55 = vpop.f32.mrb[120].mxu1 }
0x1486   : > { %v4831_v2 = vpop.f32.mrb[121].mxu1  ;;  %4000 = vrot.lane.b32.xlu0 %v3750_v55, %s5107_s15 }
0x1487   : > { %v3753_v5 = vpop.f32.mrb[122].mxu1  ;;  %v4015_v2 = vsel %vm365_vm2, %v5280_v61, %v3911_v27 }
0x1488   : > { %v4832_v13 = vpop.f32.mrb[123].mxu1  ;;  %v4014_v5 = vsel %vm365_vm2, %v5278_v60, %v3909_v19 }
0x1489   : > { %v4019_v13 = vsel %vm628_vm5, %v4015_v2, %v3927_v36 }
0x148b   : > { %v3798_v34 = vpop.f32.mrb[124].mxu0 }
0x148c   : > { %4002 = vrot.lane.b32.xlu1 %v3798_v34, %s5107_s15  ;;  %v4837_v44 = vpop.f32.mrb[125].mxu0  ;;  %v4018_v34 = vsel %vm628_vm5, %v4014_v5, %v3925_v33 }
0x148d   : > { %v3801_v51 = vpop.f32.mrb[126].mxu0  ;;  %v3846_v54 = vpop.f32.mrb[124].mxu1  ;;  %v4024_v44 = vsel %vm4020_vm7, %v4019_v13, %v3943_v45 }
0x148e   : > { %v4838_v53 = vpop.f32.mrb[127].mxu0  ;;  %v4843_v57 = vpop.f32.mrb[125].mxu1  ;;  %4004 = vrot.lane.b32.xlu0 %v3846_v54, %s5107_s15  ;;  %v4023_v51 = vsel %vm4020_vm7, %v4018_v34, %v3941_v43  ;;  %v4029_v1 = vsel %vm4025_vm8, %v4024_v44, %v3959_v50 }
0x148f   : > { %v3849_v58 = vpop.f32.mrb[126].mxu1  ;;  %v4028_v53 = vsel %vm4025_vm8, %v4023_v51, %v3957_v49  ;;  %v4034_v57 = vsel %vm4030_vm9, %v4029_v1, %v3975_v30 }
0x1490   : > { %v4844_v59 = vpop.f32.mrb[127].mxu1  ;;  %v4033_v61 = vsel %vm4030_vm9, %v4028_v53, %v3973_v26  ;;  %v4039_v60 = vsel %vm4035_vm10, %v4034_v57, %v3991_v6 }
0x1491   : > { %v4038_v58 = vsel %vm4035_vm10, %v4033_v61, %v3989_v42 }
0x1492   : > { %4064 = vperm.xlu0 %4916, %v4058_v63  }
0x1493   : > { %v3894_v62 = vpop.f32.mrb[128].mxu0 }
0x1494   : > { %4006 = vrot.lane.b32.xlu1 %v3894_v62, %s5107_s15  ;;  %v4849_v0 = vpop.f32.mrb[129].mxu0 }
0x1495   : > { %v3897_v3 = vpop.f32.mrb[130].mxu0 }
0x1496   : > { %v4850_v8 = vpop.f32.mrb[131].mxu0  ;;  %4079 = vperm.xlu0 %4916, %v4061_v11  }
0x1498   : > { %4069 = vperm.xlu1 %4917, %v4059_v7   ;;  %v4922_v7 = vld [vmem:[%s5842_s3 + $0x8] sm:$0xff]  }
0x149c   : > { %4074 = vperm.xlu1 %4917, %v4060_v23  }
0x14f8   : > { %v4001_v56 = vpop.permute.xlu0 %4000 }
0x14f9   : > { %v4041_v41 = vsel %vm4040_vm11, %v4036_v39, %v4001_v56 }
0x14fe   : > { %v4003_v35 = vpop.permute.xlu1 %4002 }
0x14ff   : > { %v4042_v46 = vsel %vm4040_vm11, %v4037_v22, %v4003_v35 }
0x1500   : > { %v4049_v55 = vcombine.low %v4041_v41, %v4042_v46  ;;  %v4005_v54 = vpop.permute.xlu0 %4004 }
0x1501   : > { %v4043_v62 = vsel %vm4040_vm11, %v4038_v58, %v4005_v54 }
0x1506   : > { %v4007_v59 = vpop.permute.xlu1 %4006 }
0x1507   : > { %v4044_v0 = vsel %vm4040_vm11, %v4039_v60, %v4007_v59 }
0x1508   : > { %v4050_v63 = vcombine.low %v4043_v62, %v4044_v0 }
0x150a   : > { %v4053_v3 = vpack.c.bf16 %v4050_v63, %v4049_v55 }
0x150c   : > { %4857 = vmatprep.subr.msk.bf16.mxu1 %vm4092_vm6, %v4053_v3  ;;  %v4100_v4 = vsel %vm4092_vm6, %v4053_v3, 0 }
0x150d   : > { %4852 = vmatpush3.bf16.xpose.msra.mxu1 %v4100_v4 }
0x1511   : > { %v4065_v11 = vpop.permute.xlu0 %4064 }
0x1514   : > { %4854 = vmatmul.mubr.msk.bf16.vlgmr.msra.gmra.mrb[128].mxu1 %vm4092_vm6, %v4922_v7 }
0x1515   : > { %v4080_v21 = vpop.permute.xlu0 %4079 }
0x1517   : > { %v4070_v8 = vpop.permute.xlu1 %4069 }
0x151b   : > { %v4075_v23 = vpop.permute.xlu1 %4074 }
0x15e7   : > { %v4855_v14 = vpop.f32.mrb[128].mxu1 }
0x15e8   : > { %v4136_v18 = vpop.f32.mrb[129].mxu1  ;;  %v4145_v19 = vadd.f32 %v4855_v14, %v4075_v23 }
0x15e9   : > { %v4137_v27 = vadd.f32 %v4136_v18, %v4065_v11  ;;  %v4856_v29 = vpop.f32.mrb[130].mxu1 }
0x15ea   : > { %v4148_v33 = vadd.f32 %v4856_v29, %v4080_v21  ;;  %v4139_v36 = vpop.f32.mrb[131].mxu1  ;;  %4153 = vst.msk [vmem:[%s260_s10 + $0x10] sm:$0xff] %vm4092_vm6, %v4145_v19 }
0x15eb   : > { %4151 = vst.msk [vmem:[%s260_s10] sm:$0xff] %vm4092_vm6, %v4137_v27  ;;  %v4140_v37 = vadd.f32 %v4139_v36, %v4070_v8 }
0x15ec   : > { %4154 = vst.msk [vmem:[%s260_s10 + $0x18] sm:$0xff] %vm4092_vm6, %v4148_v33 }
0x15ed   : > { %4152 = vst.msk [vmem:[%s260_s10 + $0x8] sm:$0xff] %vm4092_vm6, %v4140_v37 }
0x15ee PF: > { %s15_s20 = sadd.s32 1, %s5073_s20   ;;  %s5845_s18 = smov %s5069_s19 }
0x15ef   : > { %p12_p5 = scmp.ge.s32.totalorder %s15_s20, 4   ;;  %s5846_s19 = smov %s5848_s21 }
0x15f1   :  { %14 = sbr.rel (!%p12_p5) target bundleno = 2 (0x2), region = 70 }

</bundles_post_ra>
